<compile_context>
chip_gen: v5e
topology: v5e:2x2
jax: 0.10.0
libtpu: 0.0.40
codegen_flags: <defaults>
</compile_context>

<pallas_src>
import math

import jax
import jax.numpy as jnp
from jax.experimental import pallas as pl
from jax.experimental.pallas import tpu as pltpu

LOG_2PI = math.log(2.0 * math.pi)
_LANE = 128


def _round_up(v, m):
    return -(-v // m) * m


def vade_forward_kernel(
    x_ref, eps_ref,
    w1_ref, b1_ref, w2_ref, b2_ref,
    whead_ref, bhead_ref,
    cw_ref, c_const_ref,
    pzc_ref,
):
    """One batch tile of the VaDE forward pass.

    MXU pushes per 8 LHS rows (v6e/v7x): w1, w2, fused mu|logvar head (N=2*l_pad),
    fused cluster quadratic-form matmul (K=2*l_pad) -> 4 total.
    """
    # ---- Encoder MLP (MXU matmuls) ----
    x = x_ref[...]
    h = jnp.dot(x, w1_ref[...], preferred_element_type=jnp.float32) + b1_ref[...]
    h = jnp.maximum(h, 0.0)
    h = jnp.dot(h, w2_ref[...], preferred_element_type=jnp.float32) + b2_ref[...]
    h = jnp.maximum(h, 0.0)

    # Fused mu|logvar head, lane-padded so the split lands on vreg boundaries.
    heads = jnp.dot(h, whead_ref[...], preferred_element_type=jnp.float32) + bhead_ref[...]
    l_pad = whead_ref.shape[1] // 2
    mu = heads[:, :l_pad]        # vreg-boundary slice; pad lanes are exactly 0
    logvar = heads[:, l_pad:]    # vreg-boundary slice; pad lanes are exactly 0

    # Lane-pad eps in-kernel (free-ish XLU/VPU) instead of widening its HBM stream.
    lat = eps_ref.shape[1]
    eps = eps_ref[...]
    if lat < l_pad:
        eps = jnp.concatenate(
            [eps, jnp.zeros((eps.shape[0], l_pad - lat), jnp.float32)], axis=1)

    # Reparameterization: z = mu + eps * exp(logvar / 2); padded lanes stay 0.
    z = mu + eps * jnp.exp(0.5 * logvar)

    # ---- gaussian_pdfs_log + log(pi), as ONE matmul against host constants ----
    #   log p(z|c) + log pi_c = const_c + z @ (mu_c*inv_sig).T + (z*z) @ (-0.5*inv_sig).T
    # with both weight blocks stacked into cw -> a single [z | z*z] @ cw push.
    zz = jnp.concatenate([z, z * z], axis=1)
    gauss = c_const_ref[...] + jnp.dot(zz, cw_ref[...], preferred_element_type=jnp.float32)
    # Padded cluster columns carry const = -1e30 -> exp -> 0 (sliced off outside).
    pzc_ref[...] = jnp.exp(gauss)


def prepare_vade_params(params):
    """One-time host-side precompute of kernel constants (hoist out of hot path)."""
    (w1, b1, w2, b2, wmu, bmu, wlv, blv, mu_c, log_sigma_c, pi) = params
    f32 = jnp.float32
    h2, lat = wmu.shape
    n_centroids = mu_c.shape[0]

    w1 = w1.astype(f32)
    w2 = w2.astype(f32)
    b1 = b1.reshape(1, -1).astype(f32)
    b2 = b2.reshape(1, -1).astype(f32)

    # Fused mu|logvar head, each half padded to a full 128-lane group.
    l_pad = _round_up(lat, _LANE)
    whead = jnp.zeros((h2, 2 * l_pad), f32)
    whead = whead.at[:, :lat].set(wmu.astype(f32))
    whead = whead.at[:, l_pad:l_pad + lat].set(wlv.astype(f32))
    bhead = jnp.zeros((1, 2 * l_pad), f32)
    bhead = bhead.at[:, :lat].set(bmu.reshape(1, lat).astype(f32))
    bhead = bhead.at[:, l_pad:l_pad + lat].set(blv.reshape(1, lat).astype(f32))

    # Cluster constants: pad K to a lane-dense 128 multiple; fold log(pi) + the
    # Gaussian normalization constant into a per-cluster additive row.
    k_pad = _round_up(n_centroids, _LANE)
    inv_sig = jnp.exp(-log_sigma_c)                         # (K, L)
    log_pi = jnp.log(jnp.maximum(pi.reshape(-1), 1e-30))    # (K,)
    const_row = (
        -0.5 * jnp.sum(LOG_2PI + log_sigma_c + mu_c * mu_c * inv_sig, axis=1)
        + log_pi
    )
    c_const = jnp.full((1, k_pad), -1e30, f32).at[0, :n_centroids].set(const_row.astype(f32))

    # Stacked weights for the single [z | z*z] @ cw matmul.
    cw = jnp.zeros((2 * l_pad, k_pad), f32)
    cw = cw.at[:lat, :n_centroids].set((mu_c * inv_sig).T.astype(f32))
    cw = cw.at[l_pad:l_pad + lat, :n_centroids].set((-0.5 * inv_sig).T.astype(f32))

    return dict(
        w1=w1, b1=b1, w2=w2, b2=b2,
        whead=whead, bhead=bhead, cw=cw, c_const=c_const,
        n_centroids=n_centroids,
    )


def vade_forward(x, eps, prepared, *, batch_tile=1024):
    w1, b1 = prepared["w1"], prepared["b1"]
    w2, b2 = prepared["w2"], prepared["b2"]
    whead, bhead = prepared["whead"], prepared["bhead"]
    cw, c_const = prepared["cw"], prepared["c_const"]
    n_centroids = prepared["n_centroids"]

    batch, d_in = x.shape
    lat = eps.shape[1]
    h1 = w1.shape[1]
    h2 = w2.shape[1]
    head_cols = whead.shape[1]        # 2 * l_pad
    k_pad = c_const.shape[1]

    # ---- Batch tiling: large tiles amortize per-step overhead ----
    tb = min(batch_tile, _round_up(batch, 8))
    # Ensure >= 2 grid steps for large batches so v7x's second TensorCore gets
    # work along the "parallel" batch axis.
    if batch >= 512 and _round_up(batch, tb) // tb < 2:
        tb = _round_up(_round_up(batch, 2) // 2, 8)

    padded_batch = _round_up(batch, tb)
    if padded_batch != batch:
        pad = padded_batch - batch
        x = jnp.pad(x, ((0, pad), (0, 0)))
        eps = jnp.pad(eps, ((0, pad), (0, 0)))
    grid = (padded_batch // tb,)

    row_map = lambda i: (i, 0)
    const_map = lambda i: (0, 0)

    in_specs = [
        pl.BlockSpec((tb, d_in), row_map),           # x
        pl.BlockSpec((tb, lat), row_map),            # eps
        pl.BlockSpec((d_in, h1), const_map),         # w1 (resident)
        pl.BlockSpec((1, h1), const_map),            # b1
        pl.BlockSpec((h1, h2), const_map),           # w2
        pl.BlockSpec((1, h2), const_map),            # b2
        pl.BlockSpec((h2, head_cols), const_map),    # whead (mu|logvar, lane-padded)
        pl.BlockSpec((1, head_cols), const_map),     # bhead
        pl.BlockSpec((head_cols, k_pad), const_map), # cw (stacked lin|sq)
        pl.BlockSpec((1, k_pad), const_map),         # c_const (+ log pi)
    ]
    out_specs = pl.BlockSpec((tb, k_pad), row_map)

    # VMEM estimate: double-buffered per-step blocks + resident constants.
    block_bytes = 4 * tb * (d_in + lat + k_pad)
    const_bytes = 4 * sum(int(a.size) for a in (w1, b1, w2, b2, whead, bhead, cw, c_const))
    vmem_est = 2 * (block_bytes + const_bytes)
    cp_kwargs = dict(dimension_semantics=("parallel",))
    if vmem_est > 12 * 1024 * 1024:
        # Only needed when tb is pushed very high (v5e's scoped default is 16 MiB).
        cp_kwargs["vmem_limit_bytes"] = min(int(1.5 * vmem_est), 48 * 1024 * 1024)

    out = pl.pallas_call(
        vade_forward_kernel,
        out_shape=jax.ShapeDtypeStruct((padded_batch, k_pad), jnp.float32),
        grid=grid,
        in_specs=in_specs,
        out_specs=out_specs,
        compiler_params=pltpu.CompilerParams(**cp_kwargs),
    )(x, eps, w1, b1, w2, b2, whead, bhead, cw, c_const)

    return out[:batch, :n_centroids]


def reference_forward(x, eps, params):
    """Pure-JAX reference identical to the PyTorch forward semantics."""
    (w1, b1, w2, b2, wmu, bmu, wlv, blv, mu_c, log_sigma_c, pi) = params
    h = jnp.maximum(x @ w1 + b1, 0.0)
    h = jnp.maximum(h @ w2 + b2, 0.0)
    mu = h @ wmu + bmu
    logvar = h @ wlv + blv
    z = mu + eps * jnp.exp(0.5 * logvar)
    # gaussian_pdfs_log (vectorized but mathematically identical to the K-loop)
    diff = z[:, None, :] - mu_c[None, :, :]                        # (B, K, L)
    q = LOG_2PI + log_sigma_c[None, :, :] + diff ** 2 / jnp.exp(log_sigma_c)[None, :, :]
    gauss_log = -0.5 * jnp.sum(q, axis=2)                          # (B, K)
    return jnp.exp(jnp.log(pi) + gauss_log)


if __name__ == "__main__":
    # Module hyperparameters (small, consistent with the forward pass)
    dimensions = [32, 64, 64, 16]   # embedding_dim=32, latent_dim=16
    n_clusters = 4
    batch = 512                     # multiple grid steps with batch_tile=256

    d_in, h1, h2, d_lat = dimensions

    key = jax.random.PRNGKey(0)
    keys = jax.random.split(key, 10)

    # Deterministic synthetic parameters (scaled small)
    w1 = 0.1 * jax.random.normal(keys[0], (d_in, h1), jnp.float32)
    b1 = 0.01 * jax.random.normal(keys[1], (1, h1), jnp.float32)
    w2 = 0.1 * jax.random.normal(keys[2], (h1, h2), jnp.float32)
    b2 = 0.01 * jax.random.normal(keys[3], (1, h2), jnp.float32)
    wmu = 0.1 * jax.random.normal(keys[4], (h2, d_lat), jnp.float32)
    bmu = jnp.zeros((1, d_lat), jnp.float32)
    wlv = 0.1 * jax.random.normal(keys[5], (h2, d_lat), jnp.float32)
    blv = jnp.zeros((1, d_lat), jnp.float32)

    # Cluster parameters (non-trivial values to exercise the math paths)
    mu_c = 0.5 * jax.random.normal(keys[6], (n_clusters, d_lat), jnp.float32)
    log_sigma_c = 1.0 + 0.1 * jax.random.normal(keys[7], (n_clusters, d_lat), jnp.float32)
    pi_raw = jax.random.uniform(keys[8], (n_clusters,), jnp.float32, 0.5, 1.5)
    pi = (pi_raw / jnp.sum(pi_raw)).reshape(1, n_clusters)

    params = (w1, b1, w2, b2, wmu, bmu, wlv, blv, mu_c, log_sigma_c, pi)

    # Deterministic inputs
    x = jax.random.normal(keys[9], (batch, d_in), jnp.float32)
    eps = jax.random.normal(jax.random.PRNGKey(1), (batch, d_lat), jnp.float32)

    # One-time constant precompute, hoisted out of the per-call hot path.
    prepared = prepare_vade_params(params)

    fwd = jax.jit(lambda xx, ee: vade_forward(xx, ee, prepared, batch_tile=256))
    pzc = jax.block_until_ready(fwd(x, eps))

    ref = reference_forward(x, eps, params)
    assert pzc.shape == (batch, n_clusters), pzc.shape
    assert jnp.allclose(pzc, ref, rtol=1e-3, atol=1e-20), (
        "mismatch vs reference: max rel err = "
        + str(float(jnp.max(jnp.abs(pzc - ref) / (jnp.abs(ref) + 1e-30))))
    )

    print("KERNEL_OK")
</pallas_src>

<mosaic_0001>
module attributes {stable_mosaic.version = 11 : i64} {
  func.func @vade_forward_kernel(%arg0: i32, %arg1: memref<256x32xf32, #tpu.memory_space<vmem>>, %arg2: memref<256x16xf32, #tpu.memory_space<vmem>>, %arg3: memref<32x64xf32, #tpu.memory_space<vmem>>, %arg4: memref<1x64xf32, #tpu.memory_space<vmem>>, %arg5: memref<64x64xf32, #tpu.memory_space<vmem>>, %arg6: memref<1x64xf32, #tpu.memory_space<vmem>>, %arg7: memref<64x256xf32, #tpu.memory_space<vmem>>, %arg8: memref<1x256xf32, #tpu.memory_space<vmem>>, %arg9: memref<256x128xf32, #tpu.memory_space<vmem>>, %arg10: memref<1x128xf32, #tpu.memory_space<vmem>>, %arg11: memref<256x128xf32, #tpu.memory_space<vmem>>) attributes {dimension_semantics = [#tpu.dimension_semantics<parallel>], iteration_bounds = array<i64: 2>, scalar_prefetch = 0 : i64, scratch_operands = 0 : i64, tpu.core_type = #tpu.core_type<tc>, window_params = [{transform_indices = @transform_0, window_bounds = array<i64: 256, 32>}, {transform_indices = @transform_1, window_bounds = array<i64: 256, 16>}, {pipeline_mode = #tpu.pipeline_mode<synchronous>, transform_indices = @transform_2, window_bounds = array<i64: 32, 64>}, {pipeline_mode = #tpu.pipeline_mode<synchronous>, transform_indices = @transform_3, window_bounds = array<i64: 1, 64>}, {pipeline_mode = #tpu.pipeline_mode<synchronous>, transform_indices = @transform_4, window_bounds = array<i64: 64, 64>}, {pipeline_mode = #tpu.pipeline_mode<synchronous>, transform_indices = @transform_5, window_bounds = array<i64: 1, 64>}, {pipeline_mode = #tpu.pipeline_mode<synchronous>, transform_indices = @transform_6, window_bounds = array<i64: 64, 256>}, {pipeline_mode = #tpu.pipeline_mode<synchronous>, transform_indices = @transform_7, window_bounds = array<i64: 1, 256>}, {pipeline_mode = #tpu.pipeline_mode<synchronous>, transform_indices = @transform_8, window_bounds = array<i64: 256, 128>}, {pipeline_mode = #tpu.pipeline_mode<synchronous>, transform_indices = @transform_9, window_bounds = array<i64: 1, 128>}, {transform_indices = @transform_10, window_bounds = array<i64: 256, 128>}]} {
    %c0 = arith.constant 0 : index
    %c0_0 = arith.constant 0 : index
    %0 = vector.load %arg1[%c0, %c0_0] : memref<256x32xf32, #tpu.memory_space<vmem>>, vector<256x32xf32>
    %c0_1 = arith.constant 0 : index
    %c0_2 = arith.constant 0 : index
    %1 = vector.load %arg3[%c0_1, %c0_2] : memref<32x64xf32, #tpu.memory_space<vmem>>, vector<32x64xf32>
    %cst = arith.constant dense<0.000000e+00> : vector<256x64xf32>
    %2 = tpu.matmul %0, %1, %cst {dimension_numbers = #tpu.dot_dimension_numbers<[1], [0], [0], [1], [0, 0, 1, 1], [], []>} : vector<256x32xf32>, vector<32x64xf32>, vector<256x64xf32> -> vector<256x64xf32>
    %c0_3 = arith.constant 0 : index
    %c0_4 = arith.constant 0 : index
    %3 = vector.load %arg4[%c0_3, %c0_4] : memref<1x64xf32, #tpu.memory_space<vmem>>, vector<1x64xf32>
    %4 = vector.broadcast %3 : vector<1x64xf32> to vector<256x64xf32>
    %5 = arith.addf %2, %4 : vector<256x64xf32>
    %cst_5 = arith.constant 0.000000e+00 : f32
    %6 = vector.broadcast %cst_5 : f32 to vector<256x64xf32>
    %7 = arith.maximumf %5, %6 : vector<256x64xf32>
    %c0_6 = arith.constant 0 : index
    %c0_7 = arith.constant 0 : index
    %8 = vector.load %arg5[%c0_6, %c0_7] : memref<64x64xf32, #tpu.memory_space<vmem>>, vector<64x64xf32>
    %cst_8 = arith.constant dense<0.000000e+00> : vector<256x64xf32>
    %9 = tpu.matmul %7, %8, %cst_8 {dimension_numbers = #tpu.dot_dimension_numbers<[1], [0], [0], [1], [0, 0, 1, 1], [], []>} : vector<256x64xf32>, vector<64x64xf32>, vector<256x64xf32> -> vector<256x64xf32>
    %c0_9 = arith.constant 0 : index
    %c0_10 = arith.constant 0 : index
    %10 = vector.load %arg6[%c0_9, %c0_10] : memref<1x64xf32, #tpu.memory_space<vmem>>, vector<1x64xf32>
    %11 = vector.broadcast %10 : vector<1x64xf32> to vector<256x64xf32>
    %12 = arith.addf %9, %11 : vector<256x64xf32>
    %cst_11 = arith.constant 0.000000e+00 : f32
    %13 = vector.broadcast %cst_11 : f32 to vector<256x64xf32>
    %14 = arith.maximumf %12, %13 : vector<256x64xf32>
    %c0_12 = arith.constant 0 : index
    %c0_13 = arith.constant 0 : index
    %15 = vector.load %arg7[%c0_12, %c0_13] : memref<64x256xf32, #tpu.memory_space<vmem>>, vector<64x256xf32>
    %cst_14 = arith.constant dense<0.000000e+00> : vector<256x256xf32>
    %16 = tpu.matmul %14, %15, %cst_14 {dimension_numbers = #tpu.dot_dimension_numbers<[1], [0], [0], [1], [0, 0, 1, 1], [], []>} : vector<256x64xf32>, vector<64x256xf32>, vector<256x256xf32> -> vector<256x256xf32>
    %c0_15 = arith.constant 0 : index
    %c0_16 = arith.constant 0 : index
    %17 = vector.load %arg8[%c0_15, %c0_16] : memref<1x256xf32, #tpu.memory_space<vmem>>, vector<1x256xf32>
    %18 = vector.broadcast %17 : vector<1x256xf32> to vector<256x256xf32>
    %19 = arith.addf %16, %18 : vector<256x256xf32>
    %20 = vector.extract_strided_slice %19 {offsets = [0, 0], sizes = [256, 128], strides = [1, 1]} : vector<256x256xf32> to vector<256x128xf32>
    %21 = vector.extract_strided_slice %19 {offsets = [0, 128], sizes = [256, 128], strides = [1, 1]} : vector<256x256xf32> to vector<256x128xf32>
    %c0_17 = arith.constant 0 : index
    %c0_18 = arith.constant 0 : index
    %22 = vector.load %arg2[%c0_17, %c0_18] : memref<256x16xf32, #tpu.memory_space<vmem>>, vector<256x16xf32>
    %cst_19 = arith.constant 0.000000e+00 : f32
    %23 = vector.broadcast %cst_19 : f32 to vector<256x112xf32>
    %24 = tpu.concatenate %22, %23 in 1 : vector<256x16xf32>, vector<256x112xf32> -> vector<256x128xf32>
    %cst_20 = arith.constant 5.000000e-01 : f32
    %25 = vector.broadcast %cst_20 : f32 to vector<256x128xf32>
    %26 = arith.mulf %25, %21 : vector<256x128xf32>
    %27 = math.exp %26 : vector<256x128xf32>
    %28 = arith.mulf %24, %27 : vector<256x128xf32>
    %29 = arith.addf %20, %28 : vector<256x128xf32>
    %30 = arith.mulf %29, %29 : vector<256x128xf32>
    %31 = tpu.concatenate %29, %30 in 1 : vector<256x128xf32>, vector<256x128xf32> -> vector<256x256xf32>
    %c0_21 = arith.constant 0 : index
    %c0_22 = arith.constant 0 : index
    %32 = vector.load %arg10[%c0_21, %c0_22] : memref<1x128xf32, #tpu.memory_space<vmem>>, vector<1x128xf32>
    %c0_23 = arith.constant 0 : index
    %c0_24 = arith.constant 0 : index
    %33 = vector.load %arg9[%c0_23, %c0_24] : memref<256x128xf32, #tpu.memory_space<vmem>>, vector<256x128xf32>
    %cst_25 = arith.constant dense<0.000000e+00> : vector<256x128xf32>
    %34 = tpu.matmul %31, %33, %cst_25 {dimension_numbers = #tpu.dot_dimension_numbers<[1], [0], [0], [1], [0, 0, 1, 1], [], []>} : vector<256x256xf32>, vector<256x128xf32>, vector<256x128xf32> -> vector<256x128xf32>
    %35 = vector.broadcast %32 : vector<1x128xf32> to vector<256x128xf32>
    %36 = arith.addf %35, %34 : vector<256x128xf32>
    %37 = math.exp %36 : vector<256x128xf32>
    %c0_26 = arith.constant 0 : index
    %c0_27 = arith.constant 0 : index
    %38 = vector.load %arg11[%c0_26, %c0_27] : memref<256x128xf32, #tpu.memory_space<vmem>>, vector<256x128xf32>
    tpu.vector_store %arg11[%c0_26, %c0_27], %37 {strides = array<i32>} : memref<256x128xf32, #tpu.memory_space<vmem>>, vector<256x128xf32>,
    return
  }
  func.func @transform_0(%arg0: i32) -> (i32, i32) {
    %c0_i32 = arith.constant 0 : i32
    %c0_i32_0 = arith.constant 0 : i32
    return %arg0, %c0_i32 : i32, i32
  }
  func.func @transform_1(%arg0: i32) -> (i32, i32) {
    %c0_i32 = arith.constant 0 : i32
    %c0_i32_0 = arith.constant 0 : i32
    return %arg0, %c0_i32 : i32, i32
  }
  func.func @transform_2(%arg0: i32) -> (i32, i32) {
    %c0_i32 = arith.constant 0 : i32
    %c0_i32_0 = arith.constant 0 : i32
    %c0_i32_1 = arith.constant 0 : i32
    return %c0_i32, %c0_i32_0 : i32, i32
  }
  func.func @transform_3(%arg0: i32) -> (i32, i32) {
    %c0_i32 = arith.constant 0 : i32
    %c0_i32_0 = arith.constant 0 : i32
    %c0_i32_1 = arith.constant 0 : i32
    return %c0_i32, %c0_i32_0 : i32, i32
  }
  func.func @transform_4(%arg0: i32) -> (i32, i32) {
    %c0_i32 = arith.constant 0 : i32
    %c0_i32_0 = arith.constant 0 : i32
    %c0_i32_1 = arith.constant 0 : i32
    return %c0_i32, %c0_i32_0 : i32, i32
  }
  func.func @transform_5(%arg0: i32) -> (i32, i32) {
    %c0_i32 = arith.constant 0 : i32
    %c0_i32_0 = arith.constant 0 : i32
    %c0_i32_1 = arith.constant 0 : i32
    return %c0_i32, %c0_i32_0 : i32, i32
  }
  func.func @transform_6(%arg0: i32) -> (i32, i32) {
    %c0_i32 = arith.constant 0 : i32
    %c0_i32_0 = arith.constant 0 : i32
    %c0_i32_1 = arith.constant 0 : i32
    return %c0_i32, %c0_i32_0 : i32, i32
  }
  func.func @transform_7(%arg0: i32) -> (i32, i32) {
    %c0_i32 = arith.constant 0 : i32
    %c0_i32_0 = arith.constant 0 : i32
    %c0_i32_1 = arith.constant 0 : i32
    return %c0_i32, %c0_i32_0 : i32, i32
  }
  func.func @transform_8(%arg0: i32) -> (i32, i32) {
    %c0_i32 = arith.constant 0 : i32
    %c0_i32_0 = arith.constant 0 : i32
    %c0_i32_1 = arith.constant 0 : i32
    return %c0_i32, %c0_i32_0 : i32, i32
  }
  func.func @transform_9(%arg0: i32) -> (i32, i32) {
    %c0_i32 = arith.constant 0 : i32
    %c0_i32_0 = arith.constant 0 : i32
    %c0_i32_1 = arith.constant 0 : i32
    return %c0_i32, %c0_i32_0 : i32, i32
  }
  func.func @transform_10(%arg0: i32) -> (i32, i32) {
    %c0_i32 = arith.constant 0 : i32
    %c0_i32_0 = arith.constant 0 : i32
    return %arg0, %c0_i32 : i32, i32
  }
}

</mosaic_0001>

<bundles_post_ra>
// kernel: _lambda_.1
= control target key start
LH: loop header
LB: loop body
LE: loop exit
PB: predicated region body
PF: predicated region fallthrough
CT: control target
= control target key end

     0   :  { %s2335_s13 = smov 0   ;;  %s3262_s0 = inlined_call_operand.vmem [shape: f32[512,32], index: 0, kind: input, shape index: {}]   ;;  %s3263_s1 = inlined_call_operand.vmem [shape: f32[512,16], index: 1, kind: input, shape index: {}]   ;;  %s3264_s2 = inlined_call_operand.vmem [shape: f32[32,64], index: 2, kind: input, shape index: {}]   ;;  %s3265_s3 = inlined_call_operand.vmem [shape: f32[1,64], index: 3, kind: input, shape index: {}]   ;;  %s3266_s4 = inlined_call_operand.vmem [shape: f32[64,64], index: 4, kind: input, shape index: {}]   ;;  %s3267_s5 = inlined_call_operand.vmem [shape: f32[1,64], index: 5, kind: input, shape index: {}]   ;;  %s3268_s6 = inlined_call_operand.vmem [shape: f32[64,256], index: 6, kind: input, shape index: {}]   ;;  %s3269_s7 = inlined_call_operand.vmem [shape: f32[1,256], index: 7, kind: input, shape index: {}]   ;;  %s3270_s8 = inlined_call_operand.vmem [shape: f32[256,128], index: 8, kind: input, shape index: {}]   ;;  %s3271_s9 = inlined_call_operand.vmem [shape: f32[1,128], index: 9, kind: input, shape index: {}]   ;;  %s3272_s10 = inlined_call_operand.vmem [shape: f32[512,128], index: 10, kind: output, shape index: {}]  }
   0x1 LB: > { %s1980_s14 = sadd.s32 4294967295, %s2278_s13   ;;  %p1984_p0 = scmp.ge.s32.totalorder %s2278_s13, 1  ;;  %s2278_s13 = sphi %s2335_s13, %s20_s13  }
   0x2   : > { %p324_p1 = scmp.lt.s32.totalorder %s2278_s13, 3 }
   0x4   : > { %p325_p2 = pnand %p1984_p0, %p324_p1 }
   0x5   : > { %s1985_s19 = sshll.u32 (!%p325_p2), %s1980_s14, 5 }
   0x6   : > { %328 = sbr.rel (%p325_p2) target bundleno = 931 (0x3a3), region = 60  ;;  %p368_p3 = scmp.lt.s32.totalorder (!%p325_p2), %s1985_s19, 63 }
   0xb   : > { %v420_v0 = vld [vmem:[%s3264_s2 + $0x18] sm:$0xff]  ;;  %v419_v1 = vld [vmem:[%s3264_s2 + $0x10] sm:$0xff]  ;;  %v418_v2 = vld [vmem:[%s3264_s2 + $0x8] sm:$0xff]  ;;  %s3274_s19 = smov (!%p368_p3, %s1985_s19), 63  ;;  %vm425_vm0 = vcmask 261120   ;;  %vm679_vm1 = vcmask 523264  }
   0xc   : > { %534 = vmatpush.msra.mxu0 %v420_v0  ;;  %2121 = vmatpush.msra.mxu3 %v420_v0  ;;  %v417_v3 = vld [vmem:[%s3264_s2] sm:$0xff]  ;;  %s2355_s24 = sshll.u32 %s3274_s19, 3  ;;  %v674_v15 = vld [vmem:[%s3266_s4 + $0x38] sm:$0xff]  ;;  %v673_v16 = vld [vmem:[%s3266_s4 + $0x30] sm:$0xff]  ;;  %vm1297_vm2 = vcmask 130048  }
   0xd   : > { %s2361_s27 = scalar_lea.vmem %s3262_s0, %s2355_s24  ;;  %784 = vmatpush.msra.mxu1 %v674_v15  ;;  %2125 = vmatpush.msra.mxu2 %v674_v15  ;;  %v672_v17 = vld [vmem:[%s3266_s4 + $0x28] sm:$0xff]  ;;  %v671_v19 = vld [vmem:[%s3266_s4 + $0x20] sm:$0xff]  ;;  %v670_v20 = vld [vmem:[%s3266_s4 + $0x18] sm:$0xff]  ;;  %s2963_s21 = scalar_lea.vmem %s3263_s1, %s2355_s24 }
   0xe   : > { %535 = vmatpush.msra.mxu0 %v419_v1  ;;  %2122 = vmatpush.msra.mxu3 %v419_v1  ;;  %v385_v4 = vld [vmem:[%s2361_s27] sm:$0xff]  ;;  %v386_v5 = vld [vmem:[%s2361_s27 + $0x8] sm:$0xff]  ;;  %v387_v6 = vld [vmem:[%s2361_s27 + $0x10] sm:$0xff]  ;;  %s3143_s28 = scalar_lea.vmem %s3272_s10, %s2355_s24 }
   0xf   : > { %v388_v7 = vld [vmem:[%s2361_s27 + $0x18] sm:$0xff]  ;;  %v389_v8 = vld [vmem:[%s2361_s27 + $0x20] sm:$0xff]  ;;  %v390_v9 = vld [vmem:[%s2361_s27 + $0x28] sm:$0xff]  ;;  %785 = vmatpush.msra.mxu1 %v673_v16  ;;  %2126 = vmatpush.msra.mxu2 %v673_v16 }
  0x10   : > { %536 = vmatpush.msra.mxu0 %v418_v2  ;;  %2123 = vmatpush.msra.mxu3 %v418_v2  ;;  %v391_v10 = vld [vmem:[%s2361_s27 + $0x30] sm:$0xff]  ;;  %v392_v11 = vld [vmem:[%s2361_s27 + $0x38] sm:$0xff]  ;;  %v393_v12 = vld [vmem:[%s2361_s27 + $0x40] sm:$0xff] }
  0x11   : > { %v394_v13 = vld [vmem:[%s2361_s27 + $0x48] sm:$0xff]  ;;  %v395_v14 = vld [vmem:[%s2361_s27 + $0x50] sm:$0xff]  ;;  %v396_v18 = vld [vmem:[%s2361_s27 + $0x58] sm:$0xff]  ;;  %786 = vmatpush.msra.mxu1 %v672_v17  ;;  %2127 = vmatpush.msra.mxu2 %v672_v17 }
  0x12   : > { %537 = vmatpush.msra.mxu0 %v417_v3  ;;  %2124 = vmatpush.msra.mxu3 %v417_v3  ;;  %v669_v21 = vld [vmem:[%s3266_s4 + $0x10] sm:$0xff]  ;;  %v397_v22 = vld [vmem:[%s2361_s27 + $0x60] sm:$0xff]  ;;  %v668_v23 = vld [vmem:[%s3266_s4 + $0x8] sm:$0xff] }
  0x13   : > { %1991 = vmatmul.msk.f32.vlgmr.msra.gmra.mxu0 %vm425_vm0, %v385_v4  ;;  %787 = vmatpush.msra.mxu1 %v671_v19  ;;  %v667_v24 = vld [vmem:[%s3266_s4] sm:$0xff]  ;;  %v402_v25 = vld [vmem:[%s2361_s27 + $0x88] sm:$0xff]  ;;  %v403_v27 = vld [vmem:[%s2361_s27 + $0x90] sm:$0xff] }
  0x14   : > { %2128 = vmatpush.msra.mxu2 %v671_v19  ;;  %2008 = vmatmul.msk.f32.vlgmr.msra.gmra.mxu3 %vm425_vm0, %v402_v25  ;;  %v398_v26 = vld [vmem:[%s2361_s27 + $0x68] sm:$0xff]  ;;  %v399_v28 = vld [vmem:[%s2361_s27 + $0x70] sm:$0xff]  ;;  %v404_v29 = vld [vmem:[%s2361_s27 + $0x98] sm:$0xff] }
  0x15   : > { %788 = vmatpush.msra.mxu1 %v670_v20  ;;  %v400_v30 = vld [vmem:[%s2361_s27 + $0x78] sm:$0xff]  ;;  %v405_v31 = vld [vmem:[%s2361_s27 + $0xa0] sm:$0xff]  ;;  %v406_v37 = vld [vmem:[%s2361_s27 + $0xa8] sm:$0xff] }
  0x16   : > { %2129 = vmatpush.msra.mxu2 %v670_v20  ;;  %v2430_v32 = vld [vmem:[%s3265_s3] ss:$0 sm:$0xff]  ;;  %v407_v41 = vld [vmem:[%s2361_s27 + $0xb0] sm:$0xff]  ;;  %v408_v45 = vld [vmem:[%s2361_s27 + $0xb8] sm:$0xff] }
  0x17   : > { %789 = vmatpush.msra.mxu1 %v669_v21  ;;  %v401_v34 = vld [vmem:[%s2361_s27 + $0x80] sm:$0xff]  ;;  %v410_v53 = vld [vmem:[%s2361_s27 + $0xc8] sm:$0xff]  ;;  %v411_v57 = vld [vmem:[%s2361_s27 + $0xd0] sm:$0xff] }
  0x18   : > { %2130 = vmatpush.msra.mxu2 %v669_v21  ;;  %v409_v49 = vld [vmem:[%s2361_s27 + $0xc0] sm:$0xff]  ;;  %v412_v61 = vld [vmem:[%s2361_s27 + $0xd8] sm:$0xff]  ;;  %v934_v17 = vld [vmem:[%s3268_s6 + $0x68] sm:$0xff] }
  0x19   : > { %790 = vmatpush.msra.mxu1 %v668_v23  ;;  %v413_v1 = vld [vmem:[%s2361_s27 + $0xe0] sm:$0xff]  ;;  %v932_v19 = vld [vmem:[%s3268_s6 + $0x58] sm:$0xff]  ;;  %v930_v20 = vld [vmem:[%s3268_s6 + $0x48] sm:$0xff] }
  0x1a   : > { %2131 = vmatpush.msra.mxu2 %v668_v23  ;;  %v928_v21 = vld [vmem:[%s3268_s6 + $0x38] sm:$0xff] }
  0x1b   : > { %1992 = vmatmul.msk.f32.gmra.mxu0 %vm425_vm0, %v386_v5  ;;  %791 = vmatpush.msra.mxu1 %v667_v24  ;;  %v414_v5 = vld [vmem:[%s2361_s27 + $0xe8] sm:$0xff] }
  0x1c   : > { %2132 = vmatpush.msra.mxu2 %v667_v24  ;;  %2009 = vmatmul.msk.f32.gmra.mxu3 %vm425_vm0, %v403_v27  ;;  %v926_v24 = vld [vmem:[%s3268_s6 + $0x28] sm:$0xff]  ;;  %v935_v27 = vld [vmem:[%s3268_s6 + $0x70] sm:$0xff] }
  0x1e   : > { %1047 = vmatpush.msrb.mxu2 %v935_v27 }
  0x23   : > { %1993 = vmatmul.msk.f32.gmra.mxu0 %vm425_vm0, %v387_v6 }
  0x24   : > { %2010 = vmatmul.msk.f32.gmra.mxu3 %vm425_vm0, %v404_v29 }
  0x2b   : > { %1994 = vmatmul.msk.f32.gmra.mxu0 %vm425_vm0, %v388_v7 }
  0x2c   : > { %2011 = vmatmul.msk.f32.gmra.mxu3 %vm425_vm0, %v405_v31 }
  0x33   : > { %1995 = vmatmul.msk.f32.gmra.mxu0 %vm425_vm0, %v389_v8 }
  0x34   : > { %2012 = vmatmul.msk.f32.gmra.mxu3 %vm425_vm0, %v406_v37 }
  0x3b   : > { %1996 = vmatmul.msk.f32.gmra.mxu0 %vm425_vm0, %v390_v9  ;;  %v415_v9 = vld [vmem:[%s2361_s27 + $0xf0] sm:$0xff] }
  0x3c   : > { %2013 = vmatmul.msk.f32.gmra.mxu3 %vm425_vm0, %v407_v41 }
  0x43   : > { %1997 = vmatmul.msk.f32.gmra.mxu0 %vm425_vm0, %v391_v10 }
  0x44   : > { %2014 = vmatmul.msk.f32.gmra.mxu3 %vm425_vm0, %v408_v45 }
  0x4b   : > { %1998 = vmatmul.msk.f32.gmra.mxu0 %vm425_vm0, %v392_v11 }
  0x4c   : > { %2015 = vmatmul.msk.f32.gmra.mxu3 %vm425_vm0, %v409_v49 }
  0x53   : > { %1999 = vmatmul.msk.f32.gmra.mxu0 %vm425_vm0, %v393_v12 }
  0x54   : > { %2016 = vmatmul.msk.f32.gmra.mxu3 %vm425_vm0, %v410_v53 }
  0x5b   : > { %2000 = vmatmul.msk.f32.gmra.mxu0 %vm425_vm0, %v394_v13  ;;  %v416_v13 = vld [vmem:[%s2361_s27 + $0xf8] sm:$0xff] }
  0x5c   : > { %2017 = vmatmul.msk.f32.gmra.mxu3 %vm425_vm0, %v411_v57 }
  0x63   : > { %2001 = vmatmul.msk.f32.gmra.mxu0 %vm425_vm0, %v395_v14  ;;  %v936_v14 = vld [vmem:[%s3268_s6 + $0x78] sm:$0xff] }
  0x64   : > { %2018 = vmatmul.msk.f32.gmra.mxu3 %vm425_vm0, %v412_v61 }
  0x65   : > { %1160 = vmatpush.msrb.mxu3 %v936_v14 }
  0x67   : > { %1161 = vmatpush.msrb.mxu3 %v934_v17 }
  0x69   : > { %1162 = vmatpush.msrb.mxu3 %v932_v19 }
  0x6b   : > { %2002 = vmatmul.msk.f32.gmra.mxu0 %vm425_vm0, %v396_v18  ;;  %1163 = vmatpush.msrb.mxu3 %v930_v20 }
  0x6c   : > { %2019 = vmatmul.msk.f32.gmra.mxu3 %vm425_vm0, %v413_v1 }
  0x6d   : > { %1164 = vmatpush.msrb.mxu3 %v928_v21 }
  0x6f   : > { %1165 = vmatpush.msrb.mxu3 %v926_v24 }
  0x73   : > { %2003 = vmatmul.msk.f32.gmra.mxu0 %vm425_vm0, %v397_v22 }
  0x74   : > { %2020 = vmatmul.msk.f32.gmra.mxu3 %vm425_vm0, %v414_v5 }
  0x7b   : > { %2004 = vmatmul.msk.f32.gmra.mxu0 %vm425_vm0, %v398_v26  ;;  %v924_v26 = vld [vmem:[%s3268_s6 + $0x18] sm:$0xff] }
  0x7c   : > { %2021 = vmatmul.msk.f32.gmra.mxu3 %vm425_vm0, %v415_v9 }
  0x7d   : > { %1166 = vmatpush.msrb.mxu3 %v924_v26 }
  0x83   : > { %2005 = vmatmul.msk.f32.gmra.mxu0 %vm425_vm0, %v399_v28  ;;  %v922_v28 = vld [vmem:[%s3268_s6 + $0x8] sm:$0xff] }
  0x84   : > { %2022 = vmatmul.msk.f32.gmra.mxu3 %vm425_vm0, %v416_v13  ;;  %v927_v13 = vld [vmem:[%s3268_s6 + $0x30] sm:$0xff] }
  0x85   : > { %1167 = vmatpush.msrb.mxu3 %v922_v28 }
  0x8b   : > { %2006 = vmatmul.msk.f32.gmra.mxu0 %vm425_vm0, %v400_v30 }
  0x90   : > { %v539_v33 = vpop.f32.mrf.mxu0 }
  0x91   : > { %v540_v35 = vadd.f32 %v2430_v32, %v539_v33 }
  0x93   : > { %v635_v36 = vmax.f32 %v540_v35, 0.0  ;;  %2007 = vmatmul.msk.f32.gmra.mxu0 %vm425_vm0, %v401_v34 }
  0x95   : > { %2023 = vmatmul.msk.f32.vlgmr.msra.gmra.mxu1 %vm679_vm1, %v635_v36 }
  0x97   : > { %v590_v29 = vpop.f32.mrf.mxu3 }
  0x98   : > { %v542_v38 = vpop.f32.mrf.mxu0 }
  0x99   : > { %v543_v39 = vadd.f32 %v2430_v32, %v542_v38  ;;  %v933_v38 = vld [vmem:[%s3268_s6 + $0x60] sm:$0xff] }
  0x9a   : > { %1048 = vmatpush.msrb.mxu2 %v933_v38 }
  0x9b   : > { %v636_v40 = vmax.f32 %v543_v39, 0.0 }
  0x9d   : > { %2024 = vmatmul.msk.f32.gmra.mxu1 %vm679_vm1, %v636_v40 }
  0x9f   : > { %v593_v35 = vpop.f32.mrf.mxu3 }
  0xa0   : > { %v545_v42 = vpop.f32.mrf.mxu0  ;;  %v594_v57 = vadd.f32 %v2430_v32, %v593_v35 }
  0xa1   : > { %v546_v43 = vadd.f32 %v2430_v32, %v545_v42 }
  0xa3   : > { %v637_v44 = vmax.f32 %v546_v43, 0.0  ;;  %v2521_v43 = vld [vmem:[%s3267_s5] ss:$0 sm:$0xff] }
  0xa5   : > { %2025 = vmatmul.msk.f32.gmra.mxu1 %vm679_vm1, %v637_v44 }
  0xa7   : > { %v596_v41 = vpop.f32.mrf.mxu3 }
  0xa8   : > { %v548_v46 = vpop.f32.mrf.mxu0 }
  0xa9   : > { %v549_v47 = vadd.f32 %v2430_v32, %v548_v46 }
  0xab   : > { %v638_v48 = vmax.f32 %v549_v47, 0.0 }
  0xad   : > { %2026 = vmatmul.msk.f32.gmra.mxu1 %vm679_vm1, %v638_v48 }
  0xaf   : > { %v599_v49 = vpop.f32.mrf.mxu3 }
  0xb0   : > { %v551_v50 = vpop.f32.mrf.mxu0 }
  0xb1   : > { %v552_v51 = vadd.f32 %v2430_v32, %v551_v50 }
  0xb3   : > { %v639_v52 = vmax.f32 %v552_v51, 0.0  ;;  %v591_v51 = vadd.f32 %v2430_v32, %v590_v29 }
  0xb5   : > { %2027 = vmatmul.msk.f32.gmra.mxu1 %vm679_vm1, %v639_v52  ;;  %v931_v52 = vld [vmem:[%s3268_s6 + $0x50] sm:$0xff]  ;;  %v652_v53 = vmax.f32 %v591_v51, 0.0 }
  0xb6   : > { %1049 = vmatpush.msrb.mxu2 %v931_v52 }
  0xb8   : > { %v554_v54 = vpop.f32.mrf.mxu0 }
  0xb9   : > { %v555_v55 = vadd.f32 %v2430_v32, %v554_v54 }
  0xbb   : > { %v640_v56 = vmax.f32 %v555_v55, 0.0 }
  0xbd   : > { %2028 = vmatmul.msk.f32.gmra.mxu1 %vm679_vm1, %v640_v56 }
  0xc0   : > { %v557_v58 = vpop.f32.mrf.mxu0 }
  0xc1   : > { %v558_v59 = vadd.f32 %v2430_v32, %v557_v58  ;;  %v602_v58 = vpop.f32.mrf.mxu3 }
  0xc3   : > { %v641_v60 = vmax.f32 %v558_v59, 0.0  ;;  %v653_v59 = vmax.f32 %v594_v57, 0.0  ;;  %v921_v57 = vld [vmem:[%s3268_s6] sm:$0xff] }
  0xc5   : > { %2029 = vmatmul.msk.f32.gmra.mxu1 %vm679_vm1, %v641_v60 }
  0xc8   : > { %v560_v62 = vpop.f32.mrf.mxu0 }
  0xc9   : > { %v561_v63 = vadd.f32 %v2430_v32, %v560_v62  ;;  %v605_v1 = vpop.f32.mrf.mxu3 }
  0xca   : > { %v606_v19 = vadd.f32 %v2430_v32, %v605_v1 }
  0xcb   : > { %v642_v0 = vmax.f32 %v561_v63, 0.0  ;;  %v597_v63 = vadd.f32 %v2430_v32, %v596_v41 }
  0xcc   : > { %v657_v20 = vmax.f32 %v606_v19, 0.0 }
  0xcd   : > { %2030 = vmatmul.msk.f32.gmra.mxu1 %vm679_vm1, %v642_v0  ;;  %v929_v0 = vld [vmem:[%s3268_s6 + $0x40] sm:$0xff] }
  0xce   : > { %1050 = vmatpush.msrb.mxu2 %v929_v0 }
  0xd0   : > { %v563_v2 = vpop.f32.mrf.mxu0  ;;  %1051 = vmatpush.msrb.mxu2 %v927_v13 }
  0xd1   : > { %v564_v3 = vadd.f32 %v2430_v32, %v563_v2  ;;  %v654_v2 = vmax.f32 %v597_v63, 0.0  ;;  %v608_v9 = vpop.f32.mrf.mxu3 }
  0xd2   : > { %v609_v24 = vadd.f32 %v2430_v32, %v608_v9  ;;  %v1538_v9 = vld [vmem:[%s3270_s8 + $0x78] sm:$0xff] }
  0xd3   : > { %v643_v4 = vmax.f32 %v564_v3, 0.0  ;;  %1555 = vmatpush.msrb.mxu0 %v1538_v9  ;;  %v1547_v9 = vld [vmem:[%s3270_s8 + $0xc0] sm:$0xff] }
  0xd4   : > { %v658_v27 = vmax.f32 %v609_v24, 0.0 }
  0xd5   : > { %2031 = vmatmul.msk.f32.gmra.mxu1 %vm679_vm1, %v643_v4 }
  0xd8   : > { %v566_v6 = vpop.f32.mrf.mxu0 }
  0xd9   : > { %v567_v7 = vadd.f32 %v2430_v32, %v566_v6  ;;  %v600_v6 = vadd.f32 %v2430_v32, %v599_v49  ;;  %v611_v17 = vpop.f32.mrf.mxu3 }
  0xdb   : > { %v644_v8 = vmax.f32 %v567_v7, 0.0  ;;  %v655_v7 = vmax.f32 %v600_v6, 0.0 }
  0xdd   : > { %2032 = vmatmul.msk.f32.gmra.mxu1 %vm679_vm1, %v644_v8 }
  0xe0   : > { %v569_v10 = vpop.f32.mrf.mxu0 }
  0xe1   : > { %v570_v11 = vadd.f32 %v2430_v32, %v569_v10  ;;  %v614_v26 = vpop.f32.mrf.mxu3 }
  0xe2   : > { %v615_v38 = vadd.f32 %v2430_v32, %v614_v26 }
  0xe3   : > { %v645_v12 = vmax.f32 %v570_v11, 0.0 }
  0xe5   : > { %2033 = vmatmul.msk.f32.gmra.mxu1 %vm679_vm1, %v645_v12  ;;  %v603_v12 = vadd.f32 %v2430_v32, %v602_v58 }
  0xe7   : > { %v656_v14 = vmax.f32 %v603_v12, 0.0 }
  0xe8   : > { %v572_v15 = vpop.f32.mrf.mxu0 }
  0xe9   : > { %v573_v16 = vadd.f32 %v2430_v32, %v572_v15 }
  0xeb   : > { %v646_v18 = vmax.f32 %v573_v16, 0.0 }
  0xed   : > { %2034 = vmatmul.msk.f32.gmra.mxu1 %vm679_vm1, %v646_v18 }
  0xf0   : > { %v575_v22 = vpop.f32.mrf.mxu0 }
  0xf1   : > { %v576_v23 = vadd.f32 %v2430_v32, %v575_v22 }
  0xf3   : > { %v647_v25 = vmax.f32 %v576_v23, 0.0 }
  0xf5   : > { %2035 = vmatmul.msk.f32.gmra.mxu1 %vm679_vm1, %v647_v25  ;;  %v925_v25 = vld [vmem:[%s3268_s6 + $0x20] sm:$0xff] }
  0xf6   : > { %1052 = vmatpush.msrb.mxu2 %v925_v25 }
  0xf8   : > { %v578_v30 = vpop.f32.mrf.mxu0 }
  0xf9   : > { %v579_v31 = vadd.f32 %v2430_v32, %v578_v30 }
  0xfb   : > { %v648_v33 = vmax.f32 %v579_v31, 0.0  ;;  %v612_v31 = vadd.f32 %v2430_v32, %v611_v17 }
  0xfd   : > { %2036 = vmatmul.msk.f32.gmra.mxu1 %vm679_vm1, %v648_v33  ;;  %v617_v33 = vpop.f32.mrf.mxu3 }
 0x100   : > { %v581_v34 = vpop.f32.mrf.mxu0 }
 0x101   : > { %v582_v36 = vadd.f32 %v2430_v32, %v581_v34  ;;  %v659_v34 = vmax.f32 %v612_v31, 0.0 }
 0x103   : > { %v649_v37 = vmax.f32 %v582_v36, 0.0 }
 0x105   : > { %2037 = vmatmul.msk.f32.gmra.mxu1 %vm679_vm1, %v649_v37 }
 0x108   : > { %v584_v39 = vpop.f32.mrf.mxu0 }
 0x109   : > { %v585_v40 = vadd.f32 %v2430_v32, %v584_v39  ;;  %v923_v39 = vld [vmem:[%s3268_s6 + $0x10] sm:$0xff] }
 0x10a   : > { %1053 = vmatpush.msrb.mxu2 %v923_v39  ;;  %v1536_v39 = vld [vmem:[%s3270_s8 + $0x68] sm:$0xff] }
 0x10b   : > { %v650_v42 = vmax.f32 %v585_v40, 0.0  ;;  %v660_v40 = vmax.f32 %v615_v38, 0.0 }
 0x10c   : > { %1054 = vmatpush.msrb.mxu2 %v921_v57 }
 0x10d   : > { %2038 = vmatmul.msk.f32.gmra.mxu1 %vm679_vm1, %v650_v42  ;;  %v620_v42 = vpop.f32.mrf.mxu3 }
 0x110   : > { %v587_v44 = vpop.f32.mrf.mxu0 }
 0x111   : > { %v588_v45 = vadd.f32 %v2430_v32, %v587_v44 }
 0x112   : > { %v793_v46 = vpop.f32.mrf.mxu1 }
 0x113   : > { %v651_v47 = vmax.f32 %v588_v45, 0.0  ;;  %v2525_v48 = vadd.f32 %v2521_v43, %v793_v46  ;;  %v618_v46 = vadd.f32 %v2430_v32, %v617_v33 }
 0x115   : > { %v889_v50 = vmax.f32 %v2525_v48, 0.0  ;;  %2039 = vmatmul.msk.f32.vlgmr.msra.gmra.mxu2 %vm679_vm1, %v651_v47  ;;  %v661_v47 = vmax.f32 %v618_v46, 0.0  ;;  %v623_v52 = vpop.f32.mrf.mxu3 }
 0x116   : > { %v624_v0 = vadd.f32 %v2430_v32, %v623_v52  ;;  %v1534_v52 = vld [vmem:[%s3270_s8 + $0x58] sm:$0xff] }
 0x117   : > { %2087 = vmatmul.msk.f32.vlgmr.msrb.gmra.mxu3 %vm679_vm1, %v889_v50 }
 0x11a   : > { %v796_v54 = vpop.f32.mrf.mxu1 }
 0x11b   : > { %v2537_v55 = vadd.f32 %v2521_v43, %v796_v54  ;;  %v621_v54 = vadd.f32 %v2430_v32, %v620_v42 }
 0x11d   : > { %v890_v56 = vmax.f32 %v2537_v55, 0.0  ;;  %2040 = vmatmul.msk.f32.gmra.mxu2 %vm679_vm1, %v652_v53  ;;  %v662_v58 = vmax.f32 %v621_v54, 0.0  ;;  %v626_v1 = vpop.f32.mrf.mxu3  ;;  %v1550_v54 = vld [vmem:[%s3270_s8 + $0xd8] sm:$0xff] }
 0x11f   : > { %2088 = vmatmul.msk.f32.gmra.mxu3 %vm679_vm1, %v890_v56 }
 0x122   : > { %v799_v60 = vpop.f32.mrf.mxu1 }
 0x123   : > { %v2546_v61 = vadd.f32 %v2521_v43, %v799_v60 }
 0x125   : > { %v891_v62 = vmax.f32 %v2546_v61, 0.0  ;;  %2041 = vmatmul.msk.f32.gmra.mxu2 %vm679_vm1, %v653_v59  ;;  %v629_v12 = vpop.f32.mrf.mxu3 }
 0x126   : > { %v630_v19 = vadd.f32 %v2430_v32, %v629_v12 }
 0x127   : > { %2089 = vmatmul.msk.f32.gmra.mxu3 %vm679_vm1, %v891_v62 }
 0x12a   : > { %v802_v3 = vpop.f32.mrf.mxu1 }
 0x12b   : > { %v2558_v4 = vadd.f32 %v2521_v43, %v802_v3 }
 0x12d   : > { %v892_v5 = vmax.f32 %v2558_v4, 0.0  ;;  %2042 = vmatmul.msk.f32.gmra.mxu2 %vm679_vm1, %v654_v2  ;;  %v663_v2 = vmax.f32 %v624_v0, 0.0  ;;  %v632_v25 = vpop.f32.mrf.mxu3 }
 0x12e   : > { %v633_v31 = vadd.f32 %v2430_v32, %v632_v25 }
 0x12f   : > { %2090 = vmatmul.msk.f32.gmra.mxu3 %vm679_vm1, %v892_v5 }
 0x130   : > { %v666_v33 = vmax.f32 %v633_v31, 0.0  ;;  %v1528_v31 = vld [vmem:[%s3270_s8 + $0x28] sm:$0xff] }
 0x132   : > { %v805_v8 = vpop.f32.mrf.mxu1 }
 0x133   : > { %v2567_v10 = vadd.f32 %v2521_v43, %v805_v8  ;;  %v627_v8 = vadd.f32 %v2430_v32, %v626_v1  ;;  %v1532_v1 = vld [vmem:[%s3270_s8 + $0x48] sm:$0xff] }
 0x135   : > { %v893_v11 = vmax.f32 %v2567_v10, 0.0  ;;  %2043 = vmatmul.msk.f32.gmra.mxu2 %vm679_vm1, %v655_v7  ;;  %v664_v13 = vmax.f32 %v627_v8, 0.0  ;;  %v1531_v8 = vld [vmem:[%s3270_s8 + $0x40] sm:$0xff] }
 0x137   : > { %2091 = vmatmul.msk.f32.gmra.mxu3 %vm679_vm1, %v893_v11 }
 0x13a   : > { %v808_v15 = vpop.f32.mrf.mxu1 }
 0x13b   : > { %v2579_v16 = vadd.f32 %v2521_v43, %v808_v15 }
 0x13d   : > { %v894_v18 = vmax.f32 %v2579_v16, 0.0  ;;  %2044 = vmatmul.msk.f32.gmra.mxu2 %vm679_vm1, %v656_v14 }
 0x13f   : > { %2092 = vmatmul.msk.f32.gmra.mxu3 %vm679_vm1, %v894_v18 }
 0x142   : > { %v811_v21 = vpop.f32.mrf.mxu1 }
 0x143   : > { %v2588_v22 = vadd.f32 %v2521_v43, %v811_v21  ;;  %v1554_v21 = vld [vmem:[%s3270_s8 + $0xf8] sm:$0xff] }
 0x144   : > { %1668 = vmatpush.msrb.mxu1 %v1554_v21  ;;  %v1529_v21 = vld [vmem:[%s3270_s8 + $0x30] sm:$0xff] }
 0x145   : > { %v895_v23 = vmax.f32 %v2588_v22, 0.0  ;;  %2045 = vmatmul.msk.f32.gmra.mxu2 %vm679_vm1, %v657_v20  ;;  %v665_v20 = vmax.f32 %v630_v19, 0.0 }
 0x147   : > { %2093 = vmatmul.msk.f32.gmra.mxu3 %vm679_vm1, %v895_v23 }
 0x14a   : > { %v814_v28 = vpop.f32.mrf.mxu1 }
 0x14b   : > { %v2600_v29 = vadd.f32 %v2521_v43, %v814_v28 }
 0x14d   : > { %v896_v30 = vmax.f32 %v2600_v29, 0.0  ;;  %2046 = vmatmul.msk.f32.gmra.mxu2 %vm679_vm1, %v658_v27  ;;  %v1537_v27 = vld [vmem:[%s3270_s8 + $0x70] sm:$0xff]  ;;  %v1544_v29 = vld [vmem:[%s3270_s8 + $0xa8] sm:$0xff] }
 0x14e   : > { %1556 = vmatpush.msrb.mxu0 %v1537_v27 }
 0x14f   : > { %2094 = vmatmul.msk.f32.gmra.mxu3 %vm679_vm1, %v896_v30 }
 0x150   : > { %1557 = vmatpush.msrb.mxu0 %v1536_v39  ;;  %v1527_v39 = vld [vmem:[%s3270_s8 + $0x20] sm:$0xff] }
 0x152   : > { %v817_v35 = vpop.f32.mrf.mxu1 }
 0x153   : > { %v2609_v36 = vadd.f32 %v2521_v43, %v817_v35 }
 0x155   : > { %v897_v37 = vmax.f32 %v2609_v36, 0.0  ;;  %2047 = vmatmul.msk.f32.gmra.mxu2 %vm679_vm1, %v659_v34  ;;  %v1553_v34 = vld [vmem:[%s3270_s8 + $0xf0] sm:$0xff]  ;;  %v1543_v36 = vld [vmem:[%s3270_s8 + $0xa0] sm:$0xff] }
 0x156   : > { %1669 = vmatpush.msrb.mxu1 %v1553_v34 }
 0x157   : > { %2095 = vmatmul.msk.f32.gmra.mxu3 %vm679_vm1, %v897_v37 }
 0x15a   : > { %v820_v41 = vpop.f32.mrf.mxu1 }
 0x15b   : > { %v2621_v44 = vadd.f32 %v2521_v43, %v820_v41  ;;  %v1535_v41 = vld [vmem:[%s3270_s8 + $0x60] sm:$0xff] }
 0x15c   : > { %1558 = vmatpush.msrb.mxu0 %v1535_v41 }
 0x15d   : > { %v898_v45 = vmax.f32 %v2621_v44, 0.0  ;;  %2048 = vmatmul.msk.f32.gmra.mxu2 %vm679_vm1, %v660_v40  ;;  %v1552_v40 = vld [vmem:[%s3270_s8 + $0xe8] sm:$0xff] }
 0x15e   : > { %1670 = vmatpush.msrb.mxu1 %v1552_v40  ;;  %1559 = vmatpush.msrb.mxu0 %v1534_v52 }
 0x15f   : > { %2096 = vmatmul.msk.f32.gmra.mxu3 %vm679_vm1, %v898_v45 }
 0x162   : > { %v823_v49 = vpop.f32.mrf.mxu1 }
 0x163   : > { %v2630_v51 = vadd.f32 %v2521_v43, %v823_v49 }
 0x165   : > { %v899_v53 = vmax.f32 %v2630_v51, 0.0  ;;  %2049 = vmatmul.msk.f32.gmra.mxu2 %vm679_vm1, %v661_v47  ;;  %v1551_v47 = vld [vmem:[%s3270_s8 + $0xe0] sm:$0xff] }
 0x166   : > { %1671 = vmatpush.msrb.mxu1 %v1551_v47  ;;  %v1542_v47 = vld [vmem:[%s3270_s8 + $0x98] sm:$0xff] }
 0x167   : > { %2097 = vmatmul.msk.f32.gmra.mxu3 %vm679_vm1, %v899_v53 }
 0x168   : > { %1672 = vmatpush.msrb.mxu1 %v1550_v54  ;;  %v1525_v54 = vld [vmem:[%s3270_s8 + $0x10] sm:$0xff] }
 0x16a   : > { %v826_v59 = vpop.f32.mrf.mxu1 }
 0x16b   : > { %v2642_v60 = vadd.f32 %v2521_v43, %v826_v59  ;;  %v1549_v59 = vld [vmem:[%s3270_s8 + $0xd0] sm:$0xff] }
 0x16c   : > { %1673 = vmatpush.msrb.mxu1 %v1549_v59 }
 0x16d   : > { %v900_v63 = vmax.f32 %v2642_v60, 0.0  ;;  %2050 = vmatmul.msk.f32.gmra.mxu2 %vm679_vm1, %v662_v58  ;;  %v1533_v58 = vld [vmem:[%s3270_s8 + $0x50] sm:$0xff] }
 0x16e   : > { %1560 = vmatpush.msrb.mxu0 %v1533_v58 }
 0x16f   : > { %2098 = vmatmul.msk.f32.gmra.mxu3 %vm679_vm1, %v900_v63 }
 0x170   : > { %1561 = vmatpush.msrb.mxu0 %v1532_v1  ;;  %v1540_v1 = vld [vmem:[%s3270_s8 + $0x88] sm:$0xff] }
 0x172   : > { %v829_v3 = vpop.f32.mrf.mxu1  ;;  %1562 = vmatpush.msrb.mxu0 %v1531_v8  ;;  %v1523_v8 = vld [vmem:[%s3270_s8] sm:$0xff] }
 0x173   : > { %v2651_v6 = vadd.f32 %v2521_v43, %v829_v3 }
 0x175   : > { %v901_v7 = vmax.f32 %v2651_v6, 0.0  ;;  %2051 = vmatmul.msk.f32.gmra.mxu2 %vm679_vm1, %v663_v2  ;;  %v1548_v2 = vld [vmem:[%s3270_s8 + $0xc8] sm:$0xff]  ;;  %v1539_v6 = vld [vmem:[%s3270_s8 + $0x80] sm:$0xff] }
 0x176   : > { %1674 = vmatpush.msrb.mxu1 %v1548_v2 }
 0x177   : > { %2099 = vmatmul.msk.f32.gmra.mxu3 %vm679_vm1, %v901_v7 }
 0x178   : > { %1675 = vmatpush.msrb.mxu1 %v1547_v9  ;;  %v937_v9 = vld [vmem:[%s3269_s7] sm:$0x3] }
 0x17a   : > { %v832_v14 = vpop.f32.mrf.mxu1 }
 0x17b   : > { %v2663_v15 = vadd.f32 %v2521_v43, %v832_v14  ;;  %v1546_v14 = vld [vmem:[%s3270_s8 + $0xb8] sm:$0xff] }
 0x17c   : > { %1676 = vmatpush.msrb.mxu1 %v1546_v14 }
 0x17d   : > { %v902_v17 = vmax.f32 %v2663_v15, 0.0  ;;  %2052 = vmatmul.msk.f32.gmra.mxu2 %vm679_vm1, %v664_v13  ;;  %v1530_v13 = vld [vmem:[%s3270_s8 + $0x38] sm:$0xff] }
 0x17e   : > { %1563 = vmatpush.msrb.mxu0 %v1530_v13 }
 0x17f   : > { %2100 = vmatmul.msk.f32.gmra.mxu3 %vm679_vm1, %v902_v17 }
 0x180   : > { %1564 = vmatpush.msrb.mxu0 %v1529_v21 }
 0x182   : > { %v835_v24 = vpop.f32.mrf.mxu1  ;;  %1565 = vmatpush.msrb.mxu0 %v1528_v31 }
 0x183   : > { %v2675_v26 = vadd.f32 %v2521_v43, %v835_v24  ;;  %v1545_v24 = vld [vmem:[%s3270_s8 + $0xb0] sm:$0xff] }
 0x184   : > { %1677 = vmatpush.msrb.mxu1 %v1545_v24  ;;  %1566 = vmatpush.msrb.mxu0 %v1527_v39 }
 0x185   : > { %v903_v28 = vmax.f32 %v2675_v26, 0.0  ;;  %2053 = vmatmul.msk.f32.gmra.mxu2 %vm679_vm1, %v665_v20 }
 0x186   : > { %1678 = vmatpush.msrb.mxu1 %v1544_v29 }
 0x187   : > { %2101 = vmatmul.msk.f32.gmra.mxu3 %vm679_vm1, %v903_v28 }
 0x188   : > { %1679 = vmatpush.msrb.mxu1 %v1543_v36 }
 0x18a   : > { %v838_v35 = vpop.f32.mrf.mxu1  ;;  %1680 = vmatpush.msrb.mxu1 %v1542_v47 }
 0x18b   : > { %v2690_v38 = vadd.f32 %v2521_v43, %v838_v35 }
 0x18d   : > { %v904_v32 = vmax.f32 %v2690_v38, 0.0  ;;  %2054 = vmatmul.msk.f32.gmra.mxu2 %vm679_vm1, %v666_v33 }
 0x18f   : > { %2102 = vmatmul.msk.f32.gmra.mxu3 %vm679_vm1, %v904_v32 }
 0x195   : > { %2055 = vmatmul.msk.f32.vlgmr.msrb.gmra.mxu2 %vm679_vm1, %v889_v50 }
 0x198   : > { %v841_v42 = vpop.f32.mrf.mxu2 }
 0x199   : > { %v2710_v46 = vadd.f32 %v2521_v43, %v841_v42  ;;  %v1526_v42 = vld [vmem:[%s3270_s8 + $0x18] sm:$0xff] }
 0x19a   : > { %1567 = vmatpush.msrb.mxu0 %v1526_v42 }
 0x19b   : > { %v905_v49 = vmax.f32 %v2710_v46, 0.0 }
 0x19c   : > { %1568 = vmatpush.msrb.mxu0 %v1525_v54 }
 0x19d   : > { %2056 = vmatmul.msk.f32.gmra.mxu2 %vm679_vm1, %v890_v56  ;;  %2103 = vmatmul.msk.f32.gmra.mxu3 %vm679_vm1, %v905_v49 }
 0x1a0   : > { %v844_v48 = vpop.f32.mrf.mxu2 }
 0x1a1   : > { %v2726_v50 = vadd.f32 %v2521_v43, %v844_v48 }
 0x1a3   : > { %v906_v57 = vmax.f32 %v2726_v50, 0.0 }
 0x1a5   : > { %2057 = vmatmul.msk.f32.gmra.mxu2 %vm679_vm1, %v891_v62  ;;  %2104 = vmatmul.msk.f32.gmra.mxu3 %vm679_vm1, %v906_v57 }
 0x1a8   : > { %v847_v55 = vpop.f32.mrf.mxu2 }
 0x1a9   : > { %v2739_v56 = vadd.f32 %v2521_v43, %v847_v55  ;;  %v1541_v55 = vld [vmem:[%s3270_s8 + $0x90] sm:$0xff] }
 0x1aa   : > { %1681 = vmatpush.msrb.mxu1 %v1541_v55 }
 0x1ab   : > { %v907_v61 = vmax.f32 %v2739_v56, 0.0 }
 0x1ac   : > { %1682 = vmatpush.msrb.mxu1 %v1540_v1 }
 0x1ad   : > { %2058 = vmatmul.msk.f32.gmra.mxu2 %vm679_vm1, %v892_v5  ;;  %2105 = vmatmul.msk.f32.gmra.mxu3 %vm679_vm1, %v907_v61 }
 0x1ae   : > { %1683 = vmatpush.msrb.mxu1 %v1539_v6 }
 0x1b0   : > { %v850_v62 = vpop.f32.mrf.mxu2 }
 0x1b1   : > { %v2755_v0 = vadd.f32 %v2521_v43, %v850_v62  ;;  %v1524_v62 = vld [vmem:[%s3270_s8 + $0x8] sm:$0xff] }
 0x1b2   : > { %1569 = vmatpush.msrb.mxu0 %v1524_v62  ;;  %v1266_v62 = vld [vmem:[%s2963_s21 + $0x8] sm:$0xff] }
 0x1b3   : > { %v908_v4 = vmax.f32 %v2755_v0, 0.0 }
 0x1b4   : > { %1570 = vmatpush.msrb.mxu0 %v1523_v8  ;;  %v1299_v8 = vsel %vm1297_vm2, %v1266_v62, 0.0 }
 0x1b5   : > { %2059 = vmatmul.msk.f32.gmra.mxu2 %vm679_vm1, %v893_v11  ;;  %2106 = vmatmul.msk.f32.gmra.mxu3 %vm679_vm1, %v908_v4 }
 0x1b8   : > { %v853_v5 = vpop.f32.mrf.mxu2 }
 0x1b9   : > { %v2771_v3 = vadd.f32 %v2521_v43, %v853_v5 }
 0x1bb   : > { %v909_v10 = vmax.f32 %v2771_v3, 0.0 }
 0x1bd   : > { %2060 = vmatmul.msk.f32.gmra.mxu2 %vm679_vm1, %v894_v18  ;;  %2107 = vmatmul.msk.f32.gmra.mxu3 %vm679_vm1, %v909_v10  ;;  %v2796_v18 = vpop.f32.mrf.mxu3 }
 0x1c0   : > { %v856_v11 = vpop.f32.mrf.mxu2 }
 0x1c1   : > { %v2787_v12 = vadd.f32 %v2521_v43, %v856_v11  ;;  %v2929_v11 = vperm.slane %v937_v9, 1 }
 0x1c3   : > { %v910_v16 = vmax.f32 %v2787_v12, 0.0  ;;  %v1170_v15 = vadd.f32 %v2796_v18, %v2929_v11 }
 0x1c5   : > { %2061 = vmatmul.msk.f32.gmra.mxu2 %vm679_vm1, %v895_v23  ;;  %2108 = vmatmul.msk.f32.gmra.mxu3 %vm679_vm1, %v910_v16  ;;  %v2820_v23 = vpop.f32.mrf.mxu3 }
 0x1c6   : > { %v1173_v18 = vadd.f32 %v2820_v23, %v2929_v11  ;;  %v1265_v23 = vld [vmem:[%s2963_s21] sm:$0xff] }
 0x1c7   : > { %v1298_v47 = vsel %vm1297_vm2, %v1265_v23, 0.0 }
 0x1c8   : > { %v859_v19 = vpop.f32.mrf.mxu2  ;;  %v1331_v26 = vmul.f32 0.5, %v1173_v18 }
 0x1c9   : > { %v2805_v20 = vadd.f32 %v2521_v43, %v859_v19 }
 0x1cb   : > { %v911_v22 = vmax.f32 %v2805_v20, 0.0 }
 0x1cd   : > { %2062 = vmatmul.msk.f32.gmra.mxu2 %vm679_vm1, %v896_v30  ;;  %2109 = vmatmul.msk.f32.gmra.mxu3 %vm679_vm1, %v911_v22  ;;  %v2838_v34 = vpop.f32.mrf.mxu3 }
 0x1ce   : > { %v1176_v36 = vadd.f32 %v2838_v34, %v2929_v11 }
 0x1d0   : > { %v862_v25 = vpop.f32.mrf.mxu2 }
 0x1d1   : > { %v2823_v27 = vadd.f32 %v2521_v43, %v862_v25 }
 0x1d3   : > { %v912_v30 = vmax.f32 %v2823_v27, 0.0 }
 0x1d5   : > { %2063 = vmatmul.msk.f32.gmra.mxu2 %vm679_vm1, %v897_v37  ;;  %2110 = vmatmul.msk.f32.gmra.mxu3 %vm679_vm1, %v912_v30  ;;  %v2865_v44 = vpop.f32.mrf.mxu3 }
 0x1d8   : > { %v865_v33 = vpop.f32.mrf.mxu2 }
 0x1d9   : > { %v2841_v35 = vadd.f32 %v2521_v43, %v865_v33 }
 0x1db   : > { %v913_v37 = vmax.f32 %v2841_v35, 0.0 }
 0x1dd   : > { %2064 = vmatmul.msk.f32.gmra.mxu2 %vm679_vm1, %v898_v45  ;;  %2111 = vmatmul.msk.f32.gmra.mxu3 %vm679_vm1, %v913_v37 }
 0x1e0   : > { %v868_v40 = vpop.f32.mrf.mxu2 }
 0x1e1   : > { %v2857_v41 = vadd.f32 %v2521_v43, %v868_v40 }
 0x1e3   : > { %v914_v45 = vmax.f32 %v2857_v41, 0.0 }
 0x1e5   : > { %2065 = vmatmul.msk.f32.gmra.mxu2 %vm679_vm1, %v899_v53  ;;  %2112 = vmatmul.msk.f32.gmra.mxu3 %vm679_vm1, %v914_v45  ;;  %v2884_v53 = vpop.f32.mrf.mxu3 }
 0x1e8   : > { %v871_v52 = vpop.f32.mrf.mxu2 }
 0x1e9   : > { %v2875_v48 = vadd.f32 %v2521_v43, %v871_v52  ;;  %v1332_v52 = vmul.f32 0.5, %v1176_v36 }
 0x1eb   : > { %v915_v51 = vmax.f32 %v2875_v48, 0.0  ;;  %v1366_v46 = vmul.f32 1.442695, %v1332_v52 }
 0x1ed   : > { %2066 = vmatmul.msk.f32.gmra.mxu2 %vm679_vm1, %v900_v63  ;;  %2113 = vmatmul.msk.f32.gmra.mxu3 %vm679_vm1, %v915_v51  ;;  %v2908_v63 = vpop.f32.mrf.mxu3 }
 0x1f0   : > { %v874_v58 = vpop.f32.mrf.mxu2 }
 0x1f1   : > { %v2893_v59 = vadd.f32 %v2521_v43, %v874_v58 }
 0x1f3   : > { %v916_v60 = vmax.f32 %v2893_v59, 0.0 }
 0x1f5   : > { %2067 = vmatmul.msk.f32.gmra.mxu2 %vm679_vm1, %v901_v7  ;;  %2114 = vmatmul.msk.f32.gmra.mxu3 %vm679_vm1, %v916_v60  ;;  %v2931_v14 = vpop.f32.mrf.mxu3 }
 0x1f8   : > { %v877_v2 = vpop.f32.mrf.mxu2 }
 0x1f9   : > { %v2911_v5 = vadd.f32 %v2521_v43, %v877_v2 }
 0x1fb   : > { %v917_v7 = vmax.f32 %v2911_v5, 0.0 }
 0x1fd   : > { %2068 = vmatmul.msk.f32.gmra.mxu2 %vm679_vm1, %v902_v17  ;;  %2115 = vmatmul.msk.f32.gmra.mxu3 %vm679_vm1, %v917_v7  ;;  %v1330_v17 = vmul.f32 0.5, %v1170_v15  ;;  %v2948_v31 = vpop.f32.mrf.mxu3 }
 0x1fe   : > { %v1191_v3 = vadd.f32 %v2948_v31, %v2929_v11  ;;  %v1271_v31 = vld [vmem:[%s2963_s21 + $0x30] sm:$0xff] }
 0x1ff   : > { %v1362_v33 = vmul.f32 1.442695, %v1330_v17 }
 0x200   : > { %v880_v13 = vpop.f32.mrf.mxu2 }
 0x201   : > { %v2934_v19 = vadd.f32 %v2521_v43, %v880_v13  ;;  %2144 = vpow2.f32 %v1362_v33 }
 0x203   : > { %v918_v21 = vmax.f32 %v2934_v19, 0.0 }
 0x205   : > { %2069 = vmatmul.msk.f32.gmra.mxu2 %vm679_vm1, %v903_v28  ;;  %2116 = vmatmul.msk.f32.gmra.mxu3 %vm679_vm1, %v918_v21  ;;  %v2972_v40 = vpop.f32.mrf.mxu3 }
 0x206   : > { %v1194_v12 = vadd.f32 %v2972_v40, %v2929_v11  ;;  %v1272_v40 = vld [vmem:[%s2963_s21 + $0x38] sm:$0xff] }
 0x207   : > { %v2145_v42 = vpop.eup %2144 }
 0x208   : > { %v883_v24 = vpop.f32.mrf.mxu2  ;;  %v1426_v55 = vmul.f32 %v2145_v42, %v1298_v47 }
 0x209   : > { %v2946_v25 = vadd.f32 %v2521_v43, %v883_v24 }
 0x20b   : > { %v919_v29 = vmax.f32 %v2946_v25, 0.0 }
 0x20d   : > { %2070 = vmatmul.msk.f32.gmra.mxu2 %vm679_vm1, %v904_v32  ;;  %2117 = vmatmul.msk.f32.gmra.mxu3 %vm679_vm1, %v919_v29  ;;  %v1364_v32 = vmul.f32 1.442695, %v1331_v26  ;;  %v2991_v6 = vpop.f32.mrf.mxu3 }
 0x20f   : > { %2146 = vpow2.f32 %v1364_v32 }
 0x210   : > { %v886_v28 = vpop.f32.mrf.mxu2  ;;  %2148 = vpow2.f32 %v1366_v46 }
 0x211   : > { %v2966_v39 = vadd.f32 %v2521_v43, %v886_v28  ;;  %v2980_v43 = vperm.slane %v937_v9, 0 }
 0x213   : > { %v920_v38 = vmax.f32 %v2966_v39, 0.0 }
 0x215   : > { %2071 = vmatmul.msk.f32.gmra.mxu2 %vm679_vm1, %v905_v49  ;;  %2118 = vmatmul.msk.f32.gmra.mxu3 %vm679_vm1, %v920_v38  ;;  %v1179_v49 = vadd.f32 %v2865_v44, %v2929_v11  ;;  %v2147_v2 = vpop.eup %2146  ;;  %v1267_v44 = vld [vmem:[%s2963_s21 + $0x10] sm:$0xff]  ;;  %v3001_v32 = vpop.f32.mrf.mxu3 }
 0x216   : > { %v1427_v17 = vmul.f32 %v2147_v2, %v1299_v8  ;;  %v2149_v18 = vpop.eup %2148  ;;  %v1300_v26 = vsel %vm1297_vm2, %v1267_v44, 0.0 }
 0x217   : > { %v1333_v9 = vmul.f32 0.5, %v1179_v49  ;;  %v1428_v42 = vmul.f32 %v2149_v18, %v1300_v26  ;;  %v1337_v26 = vmul.f32 0.5, %v1191_v3 }
 0x218   : > { %v1056_v54 = vpop.f32.mrf.mxu2 }
 0x219   : > { %v1057_v34 = vadd.f32 %v1056_v54, %v2980_v43  ;;  %v1368_v50 = vmul.f32 1.442695, %v1333_v9 }
 0x21b   : > { %v1458_v58 = vadd.f32 %v1426_v55, %v1057_v34  ;;  %2150 = vpow2.f32 %v1368_v50  ;;  %v1270_v50 = vld [vmem:[%s2963_s21 + $0x28] sm:$0xff] }
 0x21c   : > { %v1303_v18 = vsel %vm1297_vm2, %v1270_v50, 0.0 }
 0x21d   : > { %2072 = vmatmul.msk.f32.gmra.mxu2 %vm679_vm1, %v906_v57  ;;  %1571 = vmatmul.f32.vlgmr.msrb.gmra.mxu0 %v1458_v58  ;;  %v1490_v1 = vmul.f32 %v1458_v58, %v1458_v58  ;;  %v1182_v57 = vadd.f32 %v2884_v53, %v2929_v11  ;;  %v1268_v53 = vld [vmem:[%s2963_s21 + $0x18] sm:$0xff]  ;;  %v3012_v49 = vpop.f32.mrf.mxu3 }
 0x21e   : > { %v1301_v34 = vsel %vm1297_vm2, %v1268_v53, 0.0 }
 0x21f   : > { %1684 = vmatmul.f32.vlgmr.msrb.gmra.mxu1 %v1490_v1  ;;  %v1334_v28 = vmul.f32 0.5, %v1182_v57 }
 0x220   : > { %v1059_v13 = vpop.f32.mrf.mxu2 }
 0x221   : > { %v1060_v15 = vadd.f32 %v1059_v13, %v2980_v43  ;;  %v1370_v56 = vmul.f32 1.442695, %v1334_v28  ;;  %v2151_v54 = vpop.eup %2150 }
 0x222   : > { %v1429_v46 = vmul.f32 %v2151_v54, %v1301_v34 }
 0x223   : > { %v1459_v24 = vadd.f32 %v1427_v17, %v1060_v15  ;;  %2152 = vpow2.f32 %v1370_v56  ;;  %v1304_v56 = vsel %vm1297_vm2, %v1271_v31, 0.0 }
 0x225   : > { %2073 = vmatmul.msk.f32.gmra.mxu2 %vm679_vm1, %v907_v61  ;;  %1574 = vmatmul.f32.gmra.mxu0 %v1459_v24  ;;  %v1491_v33 = vmul.f32 %v1459_v24, %v1459_v24  ;;  %v1185_v61 = vadd.f32 %v2908_v63, %v2929_v11  ;;  %v1269_v63 = vld [vmem:[%s2963_s21 + $0x20] sm:$0xff] }
 0x226   : > { %v1302_v9 = vsel %vm1297_vm2, %v1269_v63, 0.0 }
 0x227   : > { %1687 = vmatmul.f32.gmra.mxu1 %v1491_v33  ;;  %v1335_v55 = vmul.f32 0.5, %v1185_v61 }
 0x228   : > { %v1062_v23 = vpop.f32.mrf.mxu2 }
 0x229   : > { %v1063_v36 = vadd.f32 %v1062_v23, %v2980_v43  ;;  %v1372_v0 = vmul.f32 1.442695, %v1335_v55  ;;  %v2153_v8 = vpop.eup %2152 }
 0x22a   : > { %v1430_v24 = vmul.f32 %v2153_v8, %v1302_v9 }
 0x22b   : > { %v1460_v47 = vadd.f32 %v1428_v42, %v1063_v36  ;;  %2154 = vpow2.f32 %v1372_v0 }
 0x22d   : > { %2074 = vmatmul.msk.f32.gmra.mxu2 %vm679_vm1, %v908_v4  ;;  %1577 = vmatmul.f32.gmra.mxu0 %v1460_v47  ;;  %v1492_v52 = vmul.f32 %v1460_v47, %v1460_v47  ;;  %v1188_v4 = vadd.f32 %v2931_v14, %v2929_v11  ;;  %v1376_v47 = vmul.f32 1.442695, %v1337_v26 }
 0x22f   : > { %1690 = vmatmul.f32.gmra.mxu1 %v1492_v52  ;;  %v1336_v13 = vmul.f32 0.5, %v1188_v4  ;;  %v1338_v52 = vmul.f32 0.5, %v1194_v12 }
 0x230   : > { %v1065_v58 = vpop.f32.mrf.mxu2 }
 0x231   : > { %v1066_v62 = vadd.f32 %v1065_v58, %v2980_v43  ;;  %v1374_v14 = vmul.f32 1.442695, %v1336_v13  ;;  %v2155_v33 = vpop.eup %2154  ;;  %v1378_v20 = vmul.f32 1.442695, %v1338_v52 }
 0x232   : > { %v1431_v36 = vmul.f32 %v2155_v33, %v1303_v18 }
 0x233   : > { %v1461_v1 = vadd.f32 %v1429_v46, %v1066_v62  ;;  %2156 = vpow2.f32 %v1374_v14 }
 0x234   : > { %2158 = vpow2.f32 %v1376_v47 }
 0x235   : > { %2075 = vmatmul.msk.f32.gmra.mxu2 %vm679_vm1, %v909_v10  ;;  %1580 = vmatmul.f32.gmra.mxu0 %v1461_v1  ;;  %v1493_v2 = vmul.f32 %v1461_v1, %v1461_v1  ;;  %v3025_v10 = vpop.f32.mrf.mxu3  ;;  %v1305_v1 = vsel %vm1297_vm2, %v1272_v40, 0.0  ;;  %2160 = vpow2.f32 %v1378_v20 }
 0x237   : > { %1693 = vmatmul.f32.gmra.mxu1 %v1493_v2 }
 0x238   : > { %v1068_v15 = vpop.f32.mrf.mxu2 }
 0x239   : > { %v1069_v17 = vadd.f32 %v1068_v15, %v2980_v43  ;;  %v2157_v53 = vpop.eup %2156 }
 0x23a   : > { %v1432_v55 = vmul.f32 %v2157_v53, %v1304_v56  ;;  %v2159_v46 = vpop.eup %2158 }
 0x23b   : > { %v1462_v44 = vadd.f32 %v1430_v24, %v1069_v17  ;;  %v1433_v8 = vmul.f32 %v2159_v46, %v1305_v1  ;;  %v2161_v15 = vpop.eup %2160 }
 0x23d   : > { %2076 = vmatmul.msk.f32.gmra.mxu2 %vm679_vm1, %v910_v16  ;;  %1583 = vmatmul.f32.gmra.mxu0 %v1462_v44  ;;  %v1494_v57 = vmul.f32 %v1462_v44, %v1462_v44  ;;  %v3039_v61 = vpop.f32.mrf.mxu3 }
 0x23e   : > { %v1209_v48 = vadd.f32 %v3039_v61, %v2929_v11  ;;  %v1277_v61 = vld [vmem:[%s2963_s21 + $0x60] sm:$0xff] }
 0x23f   : > { %1696 = vmatmul.f32.gmra.mxu1 %v1494_v57 }
 0x240   : > { %v1071_v28 = vpop.f32.mrf.mxu2 }
 0x241   : > { %v1072_v23 = vadd.f32 %v1071_v28, %v2980_v43 }
 0x243   : > { %v1463_v42 = vadd.f32 %v1431_v36, %v1072_v23 }
 0x245   : > { %2077 = vmatmul.msk.f32.gmra.mxu2 %vm679_vm1, %v911_v22  ;;  %1586 = vmatmul.f32.gmra.mxu0 %v1463_v42  ;;  %v1495_v16 = vmul.f32 %v1463_v42, %v1463_v42  ;;  %v1197_v22 = vadd.f32 %v2991_v6, %v2929_v11  ;;  %v3049_v4 = vpop.f32.mrf.mxu3  ;;  %v1273_v6 = vld [vmem:[%s2963_s21 + $0x40] sm:$0xff] }
 0x246   : > { %v1306_v17 = vsel %vm1297_vm2, %v1273_v6, 0.0  ;;  %v1212_v59 = vadd.f32 %v3049_v4, %v2929_v11 }
 0x247   : > { %1699 = vmatmul.f32.gmra.mxu1 %v1495_v16  ;;  %v1339_v63 = vmul.f32 0.5, %v1197_v22  ;;  %v1434_v14 = vmul.f32 %v2161_v15, %v1306_v17 }
 0x248   : > { %v1074_v54 = vpop.f32.mrf.mxu2 }
 0x249   : > { %v1075_v34 = vadd.f32 %v1074_v54, %v2980_v43  ;;  %v1380_v27 = vmul.f32 1.442695, %v1339_v63 }
 0x24b   : > { %v1464_v58 = vadd.f32 %v1432_v55, %v1075_v34  ;;  %2162 = vpow2.f32 %v1380_v27  ;;  %v1344_v27 = vmul.f32 0.5, %v1212_v59 }
 0x24d   : > { %2078 = vmatmul.msk.f32.gmra.mxu2 %vm679_vm1, %v912_v30  ;;  %1589 = vmatmul.f32.gmra.mxu0 %v1464_v58  ;;  %v1496_v62 = vmul.f32 %v1464_v58, %v1464_v58  ;;  %v1200_v30 = vadd.f32 %v3001_v32, %v2929_v11  ;;  %v3060_v3 = vpop.f32.mrf.mxu3  ;;  %v1274_v32 = vld [vmem:[%s2963_s21 + $0x48] sm:$0xff]  ;;  %v1276_v58 = vld [vmem:[%s2963_s21 + $0x58] sm:$0xff]  ;;  %v1390_v4 = vmul.f32 1.442695, %v1344_v27 }
 0x24e   : > { %v1307_v26 = vsel %vm1297_vm2, %v1274_v32, 0.0  ;;  %v1309_v22 = vsel %vm1297_vm2, %v1276_v58, 0.0  ;;  %v1215_v5 = vadd.f32 %v3060_v3, %v2929_v11 }
 0x24f   : > { %1702 = vmatmul.f32.gmra.mxu1 %v1496_v62  ;;  %v1340_v24 = vmul.f32 0.5, %v1200_v30  ;;  %v1343_v62 = vmul.f32 0.5, %v1209_v48 }
 0x250   : > { %v1077_v0 = vpop.f32.mrf.mxu2 }
 0x251   : > { %v1078_v2 = vadd.f32 %v1077_v0, %v2980_v43  ;;  %v1382_v35 = vmul.f32 1.442695, %v1340_v24  ;;  %v2163_v18 = vpop.eup %2162  ;;  %v1278_v24 = vld [vmem:[%s2963_s21 + $0x68] sm:$0xff] }
 0x252   : > { %v1435_v42 = vmul.f32 %v2163_v18, %v1307_v26  ;;  %v1279_v18 = vld [vmem:[%s2963_s21 + $0x70] sm:$0xff] }
 0x253   : > { %v1465_v9 = vadd.f32 %v1433_v8, %v1078_v2  ;;  %2164 = vpow2.f32 %v1382_v35  ;;  %v1388_v2 = vmul.f32 1.442695, %v1343_v62 }
 0x255   : > { %2079 = vmatmul.msk.f32.gmra.mxu2 %vm679_vm1, %v913_v37  ;;  %1592 = vmatmul.f32.gmra.mxu0 %v1465_v9  ;;  %v1497_v13 = vmul.f32 %v1465_v9, %v1465_v9  ;;  %v1203_v37 = vadd.f32 %v3012_v49, %v2929_v11  ;;  %v3070_v31 = vpop.f32.mrf.mxu3  ;;  %v1275_v49 = vld [vmem:[%s2963_s21 + $0x50] sm:$0xff]  ;;  %v1310_v9 = vsel %vm1297_vm2, %v1277_v61, 0.0 }
 0x256   : > { %v1308_v53 = vsel %vm1297_vm2, %v1275_v49, 0.0  ;;  %v1218_v19 = vadd.f32 %v3070_v31, %v2929_v11  ;;  %v1280_v31 = vld [vmem:[%s2963_s21 + $0x78] sm:$0xff] }
 0x257   : > { %1705 = vmatmul.f32.gmra.mxu1 %v1497_v13  ;;  %v1341_v28 = vmul.f32 0.5, %v1203_v37 }
 0x258   : > { %v1080_v44 = vpop.f32.mrf.mxu2 }
 0x259   : > { %v1081_v50 = vadd.f32 %v1080_v44, %v2980_v43  ;;  %v1384_v41 = vmul.f32 1.442695, %v1341_v28  ;;  %v2165_v16 = vpop.eup %2164  ;;  %v1312_v28 = vsel %vm1297_vm2, %v1279_v18, 0.0 }
 0x25a   : > { %v1436_v34 = vmul.f32 %v2165_v16, %v1308_v53  ;;  %v1313_v16 = vsel %vm1297_vm2, %v1280_v31, 0.0 }
 0x25b   : > { %v1466_v57 = vadd.f32 %v1434_v14, %v1081_v50  ;;  %2166 = vpow2.f32 %v1384_v41  ;;  %v1311_v50 = vsel %vm1297_vm2, %v1278_v24, 0.0  ;;  %v1345_v14 = vmul.f32 0.5, %v1215_v5 }
 0x25d   : > { %2080 = vmatmul.msk.f32.gmra.mxu2 %vm679_vm1, %v914_v45  ;;  %1595 = vmatmul.f32.gmra.mxu0 %v1466_v57  ;;  %v1498_v33 = vmul.f32 %v1466_v57, %v1466_v57  ;;  %v1206_v45 = vadd.f32 %v3025_v10, %v2929_v11  ;;  %v1392_v3 = vmul.f32 1.442695, %v1345_v14 }
 0x25f   : > { %1708 = vmatmul.f32.gmra.mxu1 %v1498_v33  ;;  %v1342_v56 = vmul.f32 0.5, %v1206_v45 }
 0x260   : > { %v1083_v23 = vpop.f32.mrf.mxu2 }
 0x261   : > { %v1084_v36 = vadd.f32 %v1083_v23, %v2980_v43  ;;  %v1386_v10 = vmul.f32 1.442695, %v1342_v56  ;;  %v2167_v20 = vpop.eup %2166  ;;  %v1346_v23 = vmul.f32 0.5, %v1218_v19 }
 0x262   : > { %v1437_v63 = vmul.f32 %v2167_v20, %v1309_v22 }
 0x263   : > { %v1467_v47 = vadd.f32 %v1435_v42, %v1084_v36  ;;  %2168 = vpow2.f32 %v1386_v10  ;;  %v1394_v45 = vmul.f32 1.442695, %v1346_v23 }
 0x264   : > { %2170 = vpow2.f32 %v1388_v2 }
 0x265   : > { %2081 = vmatmul.msk.f32.gmra.mxu2 %vm679_vm1, %v915_v51  ;;  %1598 = vmatmul.f32.gmra.mxu0 %v1467_v47  ;;  %v1499_v12 = vmul.f32 %v1467_v47, %v1467_v47  ;;  %v3083_v51 = vpop.f32.mrf.mxu3  ;;  %2172 = vpow2.f32 %v1390_v4 }
 0x266   : > { %2174 = vpow2.f32 %v1392_v3  ;;  %v1221_v25 = vadd.f32 %v3083_v51, %v2929_v11 }
 0x267   : > { %1711 = vmatmul.f32.gmra.mxu1 %v1499_v12  ;;  %2176 = vpow2.f32 %v1394_v45 }
 0x268   : > { %v1086_v52 = vpop.f32.mrf.mxu2  ;;  %v1347_v53 = vmul.f32 0.5, %v1221_v25 }
 0x269   : > { %v1087_v54 = vadd.f32 %v1086_v52, %v2980_v43  ;;  %v2169_v8 = vpop.eup %2168 }
 0x26a   : > { %v1438_v15 = vmul.f32 %v2169_v8, %v1310_v9  ;;  %v2171_v44 = vpop.eup %2170  ;;  %v1396_v58 = vmul.f32 1.442695, %v1347_v53 }
 0x26b   : > { %v1468_v55 = vadd.f32 %v1436_v34, %v1087_v54  ;;  %v1439_v37 = vmul.f32 %v2171_v44, %v1311_v50  ;;  %v2173_v26 = vpop.eup %2172  ;;  %v1283_v44 = vld [vmem:[%s2963_s21 + $0x90] sm:$0xff] }
 0x26c   : > { %v1440_v47 = vmul.f32 %v2173_v26, %v1312_v28  ;;  %v2175_v12 = vpop.eup %2174  ;;  %2178 = vpow2.f32 %v1396_v58 }
 0x26d   : > { %2082 = vmatmul.msk.f32.gmra.mxu2 %vm679_vm1, %v916_v60  ;;  %1601 = vmatmul.f32.gmra.mxu0 %v1468_v55  ;;  %v1500_v40 = vmul.f32 %v1468_v55, %v1468_v55  ;;  %v1223_v6 = vpop.f32.mrf.mxu3  ;;  %v1441_v54 = vmul.f32 %v2175_v12, %v1313_v16  ;;  %v1281_v55 = vld [vmem:[%s2963_s21 + $0x80] sm:$0xff]  ;;  %v2177_v48 = vpop.eup %2176 }
 0x26e   : > { %v1224_v39 = vadd.f32 %v1223_v6, %v2929_v11  ;;  %v1314_v51 = vsel %vm1297_vm2, %v1281_v55, 0.0 }
 0x26f   : > { %1714 = vmatmul.f32.gmra.mxu1 %v1500_v40  ;;  %v1442_v62 = vmul.f32 %v2177_v48, %v1314_v51  ;;  %v1285_v48 = vld [vmem:[%s2963_s21 + $0xa0] sm:$0xff] }
 0x270   : > { %v1089_v46 = vpop.f32.mrf.mxu2  ;;  %v1348_v40 = vmul.f32 0.5, %v1224_v39 }
 0x271   : > { %v1090_v1 = vadd.f32 %v1089_v46, %v2980_v43 }
 0x272   : > { %v1398_v61 = vmul.f32 1.442695, %v1348_v40  ;;  %v2179_v9 = vpop.eup %2178 }
 0x273   : > { %v1469_v0 = vadd.f32 %v1437_v63, %v1090_v1  ;;  %v3129_v63 = vld [vmem:[%s3271_s9] ss:$0 sm:$0xff] }
 0x274   : > { %2180 = vpow2.f32 %v1398_v61 }
 0x275   : > { %2083 = vmatmul.msk.f32.gmra.mxu2 %vm679_vm1, %v917_v7  ;;  %1604 = vmatmul.f32.gmra.mxu0 %v1469_v0  ;;  %v1501_v60 = vmul.f32 %v1469_v0, %v1469_v0  ;;  %v1226_v32 = vpop.f32.mrf.mxu3  ;;  %v1282_v0 = vld [vmem:[%s2963_s21 + $0x88] sm:$0xff] }
 0x276   : > { %v1227_v2 = vadd.f32 %v1226_v32, %v2929_v11  ;;  %v1315_v6 = vsel %vm1297_vm2, %v1282_v0, 0.0 }
 0x277   : > { %1717 = vmatmul.f32.gmra.mxu1 %v1501_v60  ;;  %v1443_v4 = vmul.f32 %v2179_v9, %v1315_v6 }
 0x278   : > { %v1092_v30 = vpop.f32.mrf.mxu2 }
 0x279   : > { %v1093_v13 = vadd.f32 %v1092_v30, %v2980_v43 }
 0x27b   : > { %v1470_v17 = vadd.f32 %v1438_v15, %v1093_v13  ;;  %v1349_v13 = vmul.f32 0.5, %v1227_v2 }
 0x27d   : > { %2084 = vmatmul.msk.f32.gmra.mxu2 %vm679_vm1, %v918_v21  ;;  %1607 = vmatmul.f32.gmra.mxu0 %v1470_v17  ;;  %v1502_v7 = vmul.f32 %v1470_v17, %v1470_v17  ;;  %v1229_v49 = vpop.f32.mrf.mxu3  ;;  %v1400_v50 = vmul.f32 1.442695, %v1349_v13 }
 0x27e   : > { %v1230_v14 = vadd.f32 %v1229_v49, %v2929_v11  ;;  %v1284_v49 = vld [vmem:[%s2963_s21 + $0x98] sm:$0xff] }
 0x27f   : > { %1720 = vmatmul.f32.gmra.mxu1 %v1502_v7  ;;  %v1317_v16 = vsel %vm1297_vm2, %v1284_v49, 0.0 }
 0x280   : > { %v1095_v57 = vpop.f32.mrf.mxu2  ;;  %v1350_v3 = vmul.f32 0.5, %v1230_v14 }
 0x281   : > { %v1096_v35 = vadd.f32 %v1095_v57, %v2980_v43 }
 0x283   : > { %v1471_v33 = vadd.f32 %v1439_v37, %v1096_v35  ;;  %v2181_v37 = vpop.eup %2180 }
 0x285   : > { %2085 = vmatmul.msk.f32.gmra.mxu2 %vm679_vm1, %v919_v29  ;;  %1610 = vmatmul.f32.gmra.mxu0 %v1471_v33  ;;  %v1503_v21 = vmul.f32 %v1471_v33, %v1471_v33  ;;  %v1232_v10 = vpop.f32.mrf.mxu3  ;;  %v1316_v33 = vsel %vm1297_vm2, %v1283_v44, 0.0 }
 0x286   : > { %v1233_v31 = vadd.f32 %v1232_v10, %v2929_v11 }
 0x287   : > { %1723 = vmatmul.f32.gmra.mxu1 %v1503_v21 }
 0x288   : > { %v1098_v36 = vpop.f32.mrf.mxu2 }
 0x289   : > { %v1099_v42 = vadd.f32 %v1098_v36, %v2980_v43  ;;  %v1444_v36 = vmul.f32 %v2181_v37, %v1316_v33 }
 0x28b   : > { %v1472_v41 = vadd.f32 %v1440_v47, %v1099_v42 }
 0x28d   : > { %2086 = vmatmul.msk.f32.gmra.mxu2 %vm679_vm1, %v920_v38  ;;  %1613 = vmatmul.f32.gmra.mxu0 %v1472_v41  ;;  %v1504_v29 = vmul.f32 %v1472_v41, %v1472_v41  ;;  %v1235_v27 = vpop.f32.mrf.mxu3  ;;  %v1402_v41 = vmul.f32 1.442695, %v1350_v3 }
 0x28e   : > { %v1236_v40 = vadd.f32 %v1235_v27, %v2929_v11 }
 0x28f   : > { %1726 = vmatmul.f32.gmra.mxu1 %v1504_v29 }
 0x290   : > { %v1101_v56 = vpop.f32.mrf.mxu2  ;;  %v1352_v61 = vmul.f32 0.5, %v1236_v40 }
 0x291   : > { %v1102_v52 = vadd.f32 %v1101_v56, %v2980_v43  ;;  %v1351_v56 = vmul.f32 0.5, %v1233_v31 }
 0x292   : > { %v1406_v13 = vmul.f32 1.442695, %v1352_v61 }
 0x293   : > { %v1473_v34 = vadd.f32 %v1441_v54, %v1102_v52  ;;  %v1404_v51 = vmul.f32 1.442695, %v1351_v56 }
 0x295   : > { %1616 = vmatmul.f32.gmra.mxu0 %v1473_v34  ;;  %v1505_v38 = vmul.f32 %v1473_v34, %v1473_v34  ;;  %v1238_v26 = vpop.f32.mrf.mxu3 }
 0x297   : > { %1729 = vmatmul.f32.gmra.mxu1 %v1505_v38 }
 0x298   : > { %v1104_v20 = vpop.f32.mrf.mxu2 }
 0x299   : > { %v1105_v22 = vadd.f32 %v1104_v20, %v2980_v43 }
 0x29a   : > { %v1572_v46 = vpop.f32.mrf.mxu0 }
 0x29b   : > { %v1474_v1 = vadd.f32 %v1442_v62, %v1105_v22 }
 0x29c   : > { %v1685_v59 = vpop.f32.mrf.mxu1 }
 0x29d   : > { %v1686_v60 = vadd.f32 %v1685_v59, %v1572_v46  ;;  %1619 = vmatmul.f32.gmra.mxu0 %v1474_v1  ;;  %v1506_v8 = vmul.f32 %v1474_v1, %v1474_v1  ;;  %v1241_v10 = vpop.f32.mrf.mxu3  ;;  %v1318_v1 = vsel %vm1297_vm2, %v1285_v48, 0.0 }
 0x29f   : > { %v1784_v30 = vadd.f32 %v3129_v63, %v1686_v60  ;;  %1732 = vmatmul.f32.gmra.mxu1 %v1506_v8 }
 0x2a0   : > { %v1107_v15 = vpop.f32.mrf.mxu2 }
 0x2a1   : > { %v1816_v17 = vmul.f32 1.442695, %v1784_v30  ;;  %v1108_v24 = vadd.f32 %v1107_v15, %v2980_v43  ;;  %v1286_v30 = vld [vmem:[%s2963_s21 + $0xa8] sm:$0xff]  ;;  %v1239_v15 = vadd.f32 %v1238_v26, %v2929_v11  ;;  %v1242_v26 = vadd.f32 %v1241_v10, %v2929_v11 }
 0x2a2   : > { %v1575_v5 = vpop.f32.mrf.mxu0  ;;  %v1319_v44 = vsel %vm1297_vm2, %v1286_v30, 0.0 }
 0x2a3   : > { %2182 = vpow2.f32 %v1816_v17  ;;  %v1475_v7 = vadd.f32 %v1443_v4, %v1108_v24  ;;  %v1353_v14 = vmul.f32 0.5, %v1239_v15  ;;  %v1354_v31 = vmul.f32 0.5, %v1242_v26 }
 0x2a4   : > { %v1688_v57 = vpop.f32.mrf.mxu1  ;;  %2184 = vpow2.f32 %v1400_v50 }
 0x2a5   : > { %v1689_v32 = vadd.f32 %v1688_v57, %v1575_v5  ;;  %1622 = vmatmul.f32.gmra.mxu0 %v1475_v7  ;;  %v1507_v35 = vmul.f32 %v1475_v7, %v1475_v7  ;;  %v1244_v24 = vpop.f32.mrf.mxu3 }
 0x2a7   : > { %v1785_v18 = vadd.f32 %v3129_v63, %v1689_v32  ;;  %1735 = vmatmul.f32.gmra.mxu1 %v1507_v35 }
 0x2a8   : > { %v1110_v19 = vpop.f32.mrf.mxu2 }
 0x2a9   : > { %v2183_v21 = vpop.eup %2182  ;;  %v1818_v28 = vmul.f32 1.442695, %v1785_v18  ;;  %v1111_v23 = vadd.f32 %v1110_v19, %v2980_v43  ;;  %v1287_v19 = vld [vmem:[%s2963_s21 + $0xb0] sm:$0xff] }
 0x2aa   : > { %1880 = vst [vmem:[%s3143_s28] sm:$0xff] %v2183_v21  ;;  %v1578_v42 = vpop.f32.mrf.mxu0  ;;  %v2185_v12 = vpop.eup %2184  ;;  %v1408_v21 = vmul.f32 1.442695, %v1353_v14 }
 0x2ab   : > { %2186 = vpow2.f32 %v1818_v28  ;;  %v1476_v47 = vadd.f32 %v1444_v36, %v1111_v23  ;;  %v1445_v58 = vmul.f32 %v2185_v12, %v1317_v16 }
 0x2ac   : > { %v1691_v45 = vpop.f32.mrf.mxu1  ;;  %2188 = vpow2.f32 %v1402_v41 }
 0x2ad   : > { %v1692_v25 = vadd.f32 %v1691_v45, %v1578_v42  ;;  %1625 = vmatmul.f32.gmra.mxu0 %v1476_v47  ;;  %v1508_v29 = vmul.f32 %v1476_v47, %v1476_v47  ;;  %v1320_v47 = vsel %vm1297_vm2, %v1287_v19, 0.0  ;;  %v1247_v49 = vpop.f32.mrf.mxu3 }
 0x2af   : > { %v1786_v53 = vadd.f32 %v3129_v63, %v1692_v25  ;;  %1738 = vmatmul.f32.gmra.mxu1 %v1508_v29 }
 0x2b0   : > { %v1113_v52 = vpop.f32.mrf.mxu2 }
 0x2b1   : > { %v2187_v54 = vpop.eup %2186  ;;  %v1820_v34 = vmul.f32 1.442695, %v1786_v53  ;;  %v1114_v55 = vadd.f32 %v1113_v52, %v2980_v43  ;;  %v1288_v52 = vld [vmem:[%s2963_s21 + $0xb8] sm:$0xff] }
 0x2b2   : > { %1881 = vst [vmem:[%s3143_s28 + $0x8] sm:$0xff] %v2187_v54  ;;  %v1581_v39 = vpop.f32.mrf.mxu0  ;;  %v2189_v46 = vpop.eup %2188  ;;  %v1410_v54 = vmul.f32 1.442695, %v1354_v31  ;;  %v1291_v31 = vld [vmem:[%s2963_s21 + $0xd0] sm:$0xff] }
 0x2b3   : > { %2190 = vpow2.f32 %v1820_v34  ;;  %v1477_v38 = vadd.f32 %v1445_v58, %v1114_v55  ;;  %v1446_v9 = vmul.f32 %v2189_v46, %v1318_v1  ;;  %v1245_v34 = vadd.f32 %v1244_v24, %v2929_v11 }
 0x2b4   : > { %v1694_v20 = vpop.f32.mrf.mxu1  ;;  %2192 = vpow2.f32 %v1404_v51 }
 0x2b5   : > { %v1695_v22 = vadd.f32 %v1694_v20, %v1581_v39  ;;  %1628 = vmatmul.f32.gmra.mxu0 %v1477_v38  ;;  %v1509_v62 = vmul.f32 %v1477_v38, %v1477_v38  ;;  %v1321_v38 = vsel %vm1297_vm2, %v1288_v52, 0.0  ;;  %v1355_v51 = vmul.f32 0.5, %v1245_v34 }
 0x2b6   : > { %v1324_v52 = vsel %vm1297_vm2, %v1291_v31, 0.0 }
 0x2b7   : > { %v1787_v0 = vadd.f32 %v3129_v63, %v1695_v22  ;;  %1741 = vmatmul.f32.gmra.mxu1 %v1509_v62  ;;  %v1250_v22 = vpop.f32.mrf.mxu3 }
 0x2b8   : > { %v1116_v2 = vpop.f32.mrf.mxu2 }
 0x2b9   : > { %v2191_v59 = vpop.eup %2190  ;;  %v1822_v60 = vmul.f32 1.442695, %v1787_v0  ;;  %v1117_v8 = vadd.f32 %v1116_v2, %v2980_v43  ;;  %v1289_v2 = vld [vmem:[%s2963_s21 + $0xc0] sm:$0xff] }
 0x2ba   : > { %1882 = vst [vmem:[%s3143_s28 + $0x10] sm:$0xff] %v2191_v59  ;;  %v1584_v6 = vpop.f32.mrf.mxu0  ;;  %v2193_v7 = vpop.eup %2192  ;;  %v1412_v59 = vmul.f32 1.442695, %v1355_v51  ;;  %v1322_v30 = vsel %vm1297_vm2, %v1289_v2, 0.0 }
 0x2bb   : > { %2194 = vpow2.f32 %v1822_v60  ;;  %v1478_v27 = vadd.f32 %v1446_v9, %v1117_v8  ;;  %v1447_v33 = vmul.f32 %v2193_v7, %v1319_v44  ;;  %v1248_v60 = vadd.f32 %v1247_v49, %v2929_v11 }
 0x2bc   : > { %v1697_v17 = vpop.f32.mrf.mxu1  ;;  %2196 = vpow2.f32 %v1406_v13 }
 0x2bd   : > { %v1698_v4 = vadd.f32 %v1697_v17, %v1584_v6  ;;  %1631 = vmatmul.f32.gmra.mxu0 %v1478_v27  ;;  %v1510_v5 = vmul.f32 %v1478_v27, %v1478_v27  ;;  %v1356_v15 = vmul.f32 0.5, %v1248_v60 }
 0x2bf   : > { %v1788_v50 = vadd.f32 %v3129_v63, %v1698_v4  ;;  %1744 = vmatmul.f32.gmra.mxu1 %v1510_v5 }
 0x2c0   : > { %v1119_v57 = vpop.f32.mrf.mxu2 }
 0x2c1   : > { %v2195_v32 = vpop.eup %2194  ;;  %v1824_v35 = vmul.f32 1.442695, %v1788_v50  ;;  %v1120_v37 = vadd.f32 %v1119_v57, %v2980_v43  ;;  %v1253_v50 = vpop.f32.mrf.mxu3  ;;  %v1290_v57 = vld [vmem:[%s2963_s21 + $0xc8] sm:$0xff] }
 0x2c2   : > { %1883 = vst [vmem:[%s3143_s28 + $0x18] sm:$0xff] %v2195_v32  ;;  %v1587_v18 = vpop.f32.mrf.mxu0  ;;  %v2197_v42 = vpop.eup %2196  ;;  %v1414_v32 = vmul.f32 1.442695, %v1356_v15  ;;  %v1323_v19 = vsel %vm1297_vm2, %v1290_v57, 0.0 }
 0x2c3   : > { %2198 = vpow2.f32 %v1824_v35  ;;  %v1479_v3 = vadd.f32 %v1447_v33, %v1120_v37  ;;  %v1448_v16 = vmul.f32 %v2197_v42, %v1320_v47  ;;  %v1251_v35 = vadd.f32 %v1250_v22, %v2929_v11 }
 0x2c4   : > { %v1700_v28 = vpop.f32.mrf.mxu1  ;;  %2200 = vpow2.f32 %v1408_v21 }
 0x2c5   : > { %v1701_v23 = vadd.f32 %v1700_v28, %v1587_v18  ;;  %1634 = vmatmul.f32.gmra.mxu0 %v1479_v3  ;;  %v1511_v36 = vmul.f32 %v1479_v3, %v1479_v3  ;;  %v1357_v26 = vmul.f32 0.5, %v1251_v35 }
 0x2c7   : > { %v1789_v41 = vadd.f32 %v3129_v63, %v1701_v23  ;;  %1747 = vmatmul.f32.gmra.mxu1 %v1511_v36 }
 0x2c8   : > { %v1122_v45 = vpop.f32.mrf.mxu2 }
 0x2c9   : > { %v2199_v25 = vpop.eup %2198  ;;  %v1826_v29 = vmul.f32 1.442695, %v1789_v41  ;;  %v1123_v12 = vadd.f32 %v1122_v45, %v2980_v43  ;;  %v1416_v45 = vmul.f32 1.442695, %v1357_v26 }
 0x2ca   : > { %1884 = vst [vmem:[%s3143_s28 + $0x20] sm:$0xff] %v2199_v25  ;;  %v1590_v53 = vpop.f32.mrf.mxu0  ;;  %v2201_v10 = vpop.eup %2200  ;;  %v1254_v25 = vadd.f32 %v1253_v50, %v2929_v11 }
 0x2cb   : > { %2202 = vpow2.f32 %v1826_v29  ;;  %v1480_v56 = vadd.f32 %v1448_v16, %v1123_v12  ;;  %v1449_v1 = vmul.f32 %v2201_v10, %v1321_v38  ;;  %v1256_v12 = vpop.f32.mrf.mxu3 }
 0x2cc   : > { %v1703_v55 = vpop.f32.mrf.mxu1  ;;  %2204 = vpow2.f32 %v1410_v54  ;;  %v1358_v34 = vmul.f32 0.5, %v1254_v25  ;;  %v1257_v22 = vadd.f32 %v1256_v12, %v2929_v11 }
 0x2cd   : > { %v1704_v58 = vadd.f32 %v1703_v55, %v1590_v53  ;;  %1637 = vmatmul.f32.gmra.mxu0 %v1480_v56  ;;  %v1512_v39 = vmul.f32 %v1480_v56, %v1480_v56 }
 0x2ce   : > { %v1359_v60 = vmul.f32 0.5, %v1257_v22 }
 0x2cf   : > { %v1790_v48 = vadd.f32 %v3129_v63, %v1704_v58  ;;  %1750 = vmatmul.f32.gmra.mxu1 %v1512_v39 }
 0x2d0   : > { %v1125_v40 = vpop.f32.mrf.mxu2 }
 0x2d1   : > { %v2203_v20 = vpop.eup %2202  ;;  %v1828_v62 = vmul.f32 1.442695, %v1790_v48  ;;  %v1126_v46 = vadd.f32 %v1125_v40, %v2980_v43  ;;  %v1292_v40 = vld [vmem:[%s2963_s21 + $0xd8] sm:$0xff] }
 0x2d2   : > { %1885 = vst [vmem:[%s3143_s28 + $0x28] sm:$0xff] %v2203_v20  ;;  %v1593_v0 = vpop.f32.mrf.mxu0  ;;  %v2205_v27 = vpop.eup %2204  ;;  %v1418_v20 = vmul.f32 1.442695, %v1358_v34 }
 0x2d3   : > { %2206 = vpow2.f32 %v1828_v62  ;;  %v1481_v61 = vadd.f32 %v1449_v1, %v1126_v46  ;;  %v1450_v7 = vmul.f32 %v2205_v27, %v1322_v30  ;;  %v1259_v2 = vpop.f32.mrf.mxu3 }
 0x2d4   : > { %v1706_v8 = vpop.f32.mrf.mxu1  ;;  %2208 = vpow2.f32 %v1412_v59 }
 0x2d5   : > { %v1707_v9 = vadd.f32 %v1706_v8, %v1593_v0  ;;  %1640 = vmatmul.f32.gmra.mxu0 %v1481_v61  ;;  %v1513_v6 = vmul.f32 %v1481_v61, %v1481_v61  ;;  %v1325_v61 = vsel %vm1297_vm2, %v1292_v40, 0.0 }
 0x2d7   : > { %v1791_v13 = vadd.f32 %v3129_v63, %v1707_v9  ;;  %1753 = vmatmul.f32.gmra.mxu1 %v1513_v6 }
 0x2d8   : > { %v1128_v17 = vpop.f32.mrf.mxu2 }
 0x2d9   : > { %v2207_v24 = vpop.eup %2206  ;;  %v1830_v4 = vmul.f32 1.442695, %v1791_v13  ;;  %v1129_v5 = vadd.f32 %v1128_v17, %v2980_v43  ;;  %v1293_v17 = vld [vmem:[%s2963_s21 + $0xe0] sm:$0xff] }
 0x2da   : > { %1886 = vst [vmem:[%s3143_s28 + $0x30] sm:$0xff] %v2207_v24  ;;  %v1596_v44 = vpop.f32.mrf.mxu0  ;;  %v2209_v3 = vpop.eup %2208  ;;  %v1420_v24 = vmul.f32 1.442695, %v1359_v60 }
 0x2db   : > { %2210 = vpow2.f32 %v1830_v4  ;;  %v1482_v14 = vadd.f32 %v1450_v7, %v1129_v5  ;;  %v1451_v47 = vmul.f32 %v2209_v3, %v1323_v19  ;;  %v1260_v4 = vadd.f32 %v1259_v2, %v2929_v11 }
 0x2dc   : > { %v1709_v37 = vpop.f32.mrf.mxu1  ;;  %2212 = vpow2.f32 %v1414_v32 }
 0x2dd   : > { %v1710_v33 = vadd.f32 %v1709_v37, %v1596_v44  ;;  %1643 = vmatmul.f32.gmra.mxu0 %v1482_v14  ;;  %v1514_v18 = vmul.f32 %v1482_v14, %v1482_v14  ;;  %v1326_v14 = vsel %vm1297_vm2, %v1293_v17, 0.0  ;;  %v1360_v32 = vmul.f32 0.5, %v1260_v4 }
 0x2df   : > { %v1792_v21 = vadd.f32 %v3129_v63, %v1710_v33  ;;  %1756 = vmatmul.f32.gmra.mxu1 %v1514_v18  ;;  %v1262_v33 = vpop.f32.mrf.mxu3 }
 0x2e0   : > { %v1131_v28 = vpop.f32.mrf.mxu2 }
 0x2e1   : > { %v2211_v23 = vpop.eup %2210  ;;  %v1832_v36 = vmul.f32 1.442695, %v1792_v21  ;;  %v1132_v42 = vadd.f32 %v1131_v28, %v2980_v43  ;;  %v1294_v28 = vld [vmem:[%s2963_s21 + $0xe8] sm:$0xff] }
 0x2e2   : > { %1887 = vst [vmem:[%s3143_s28 + $0x38] sm:$0xff] %v2211_v23  ;;  %v1599_v49 = vpop.f32.mrf.mxu0  ;;  %v2213_v56 = vpop.eup %2212  ;;  %v1422_v23 = vmul.f32 1.442695, %v1360_v32  ;;  %v1327_v31 = vsel %vm1297_vm2, %v1294_v28, 0.0 }
 0x2e3   : > { %2214 = vpow2.f32 %v1832_v36  ;;  %v1483_v41 = vadd.f32 %v1451_v47, %v1132_v42  ;;  %v1452_v38 = vmul.f32 %v2213_v56, %v1324_v52  ;;  %v1263_v36 = vadd.f32 %v1262_v33, %v2929_v11 }
 0x2e4   : > { %v1712_v29 = vpop.f32.mrf.mxu1  ;;  %2216 = vpow2.f32 %v1416_v45 }
 0x2e5   : > { %v1713_v16 = vadd.f32 %v1712_v29, %v1599_v49  ;;  %1646 = vmatmul.f32.gmra.mxu0 %v1483_v41  ;;  %v1515_v53 = vmul.f32 %v1483_v41, %v1483_v41  ;;  %v1361_v25 = vmul.f32 0.5, %v1263_v36 }
 0x2e7   : > { %v1793_v54 = vadd.f32 %v3129_v63, %v1713_v16  ;;  %1759 = vmatmul.f32.gmra.mxu1 %v1515_v53  ;;  %v1424_v34 = vmul.f32 1.442695, %v1361_v25 }
 0x2e8   : > { %v1134_v55 = vpop.f32.mrf.mxu2 }
 0x2e9   : > { %v2215_v58 = vpop.eup %2214  ;;  %v1834_v39 = vmul.f32 1.442695, %v1793_v54  ;;  %v1135_v10 = vadd.f32 %v1134_v55, %v2980_v43  ;;  %v1295_v54 = vld [vmem:[%s2963_s21 + $0xf0] sm:$0xff] }
 0x2ea   : > { %1888 = vst [vmem:[%s3143_s28 + $0x40] sm:$0xff] %v2215_v58  ;;  %v1602_v48 = vpop.f32.mrf.mxu0  ;;  %v2217_v0 = vpop.eup %2216 }
 0x2eb   : > { %2218 = vpow2.f32 %v1834_v39  ;;  %v1484_v51 = vadd.f32 %v1452_v38, %v1135_v10  ;;  %v1453_v30 = vmul.f32 %v2217_v0, %v1325_v61  ;;  %v1328_v38 = vsel %vm1297_vm2, %v1295_v54, 0.0  ;;  %v1296_v0 = vld [vmem:[%s2963_s21 + $0xf8] sm:$0xff] }
 0x2ec   : > { %v1715_v62 = vpop.f32.mrf.mxu1  ;;  %2220 = vpow2.f32 %v1418_v20 }
 0x2ed   : > { %v1716_v46 = vadd.f32 %v1715_v62, %v1602_v48  ;;  %1649 = vmatmul.f32.gmra.mxu0 %v1484_v51  ;;  %v1516_v1 = vmul.f32 %v1484_v51, %v1484_v51 }
 0x2ef   : > { %v1794_v59 = vadd.f32 %v3129_v63, %v1716_v46  ;;  %1762 = vmatmul.f32.gmra.mxu1 %v1516_v1 }
 0x2f0   : > { %v1137_v8 = vpop.f32.mrf.mxu2 }
 0x2f1   : > { %v2219_v9 = vpop.eup %2218  ;;  %v1836_v6 = vmul.f32 1.442695, %v1794_v59  ;;  %v1138_v27 = vadd.f32 %v1137_v8, %v2980_v43  ;;  %v1329_v8 = vsel %vm1297_vm2, %v1296_v0, 0.0 }
 0x2f2   : > { %1889 = vst [vmem:[%s3143_s28 + $0x48] sm:$0xff] %v2219_v9  ;;  %v1605_v13 = vpop.f32.mrf.mxu0  ;;  %v2221_v50 = vpop.eup %2220 }
 0x2f3   : > { %2222 = vpow2.f32 %v1836_v6  ;;  %v1485_v15 = vadd.f32 %v1453_v30, %v1138_v27  ;;  %v1454_v19 = vmul.f32 %v2221_v50, %v1326_v14 }
 0x2f4   : > { %v1718_v5 = vpop.f32.mrf.mxu1  ;;  %2224 = vpow2.f32 %v1420_v24 }
 0x2f5   : > { %v1719_v7 = vadd.f32 %v1718_v5, %v1605_v13  ;;  %1652 = vmatmul.f32.gmra.mxu0 %v1485_v15  ;;  %v1517_v44 = vmul.f32 %v1485_v15, %v1485_v15 }
 0x2f7   : > { %v1795_v57 = vadd.f32 %v3129_v63, %v1719_v7  ;;  %1765 = vmatmul.f32.gmra.mxu1 %v1517_v44 }
 0x2f8   : > { %v1140_v35 = vpop.f32.mrf.mxu2 }
 0x2f9   : > { %v2223_v37 = vpop.eup %2222  ;;  %v1838_v18 = vmul.f32 1.442695, %v1795_v57  ;;  %v1141_v3 = vadd.f32 %v1140_v35, %v2980_v43 }
 0x2fa   : > { %1890 = vst [vmem:[%s3143_s28 + $0x50] sm:$0xff] %v2223_v37  ;;  %v1608_v21 = vpop.f32.mrf.mxu0  ;;  %v2225_v41 = vpop.eup %2224 }
 0x2fb   : > { %2226 = vpow2.f32 %v1838_v18  ;;  %v1486_v26 = vadd.f32 %v1454_v19, %v1141_v3  ;;  %v1455_v11 = vmul.f32 %v2225_v41, %v1327_v31 }
 0x2fc   : > { %v1721_v42 = vpop.f32.mrf.mxu1  ;;  %2228 = vpow2.f32 %v1422_v23 }
 0x2fd   : > { %v1722_v47 = vadd.f32 %v1721_v42, %v1608_v21  ;;  %1655 = vmatmul.f32.gmra.mxu0 %v1486_v26  ;;  %v1518_v49 = vmul.f32 %v1486_v26, %v1486_v26 }
 0x2ff   : > { %v1796_v45 = vadd.f32 %v3129_v63, %v1722_v47  ;;  %1768 = vmatmul.f32.gmra.mxu1 %v1518_v49 }
 0x300   : > { %v1143_v29 = vpop.f32.mrf.mxu2 }
 0x301   : > { %v2227_v12 = vpop.eup %2226  ;;  %v1840_v16 = vmul.f32 1.442695, %v1796_v45  ;;  %v1144_v53 = vadd.f32 %v1143_v29, %v2980_v43 }
 0x302   : > { %1891 = vst [vmem:[%s3143_s28 + $0x58] sm:$0xff] %v2227_v12  ;;  %v1611_v56 = vpop.f32.mrf.mxu0  ;;  %v2229_v10 = vpop.eup %2228 }
 0x303   : > { %2230 = vpow2.f32 %v1840_v16  ;;  %v1487_v52 = vadd.f32 %v1455_v11, %v1144_v53  ;;  %v1456_v62 = vmul.f32 %v2229_v10, %v1328_v38 }
 0x304   : > { %v1724_v55 = vpop.f32.mrf.mxu1  ;;  %2232 = vpow2.f32 %v1424_v34 }
 0x305   : > { %v1725_v58 = vadd.f32 %v1724_v55, %v1611_v56  ;;  %1658 = vmatmul.f32.gmra.mxu0 %v1487_v52  ;;  %v1519_v39 = vmul.f32 %v1487_v52, %v1487_v52 }
 0x307   : > { %v1797_v48 = vadd.f32 %v3129_v63, %v1725_v58  ;;  %1771 = vmatmul.f32.gmra.mxu1 %v1519_v39 }
 0x308   : > { %v1146_v51 = vpop.f32.mrf.mxu2 }
 0x309   : > { %v2231_v40 = vpop.eup %2230  ;;  %v1842_v20 = vmul.f32 1.442695, %v1797_v48  ;;  %v1147_v22 = vadd.f32 %v1146_v51, %v2980_v43 }
 0x30a   : > { %1892 = vst [vmem:[%s3143_s28 + $0x60] sm:$0xff] %v2231_v40  ;;  %v1614_v46 = vpop.f32.mrf.mxu0  ;;  %v2233_v60 = vpop.eup %2232 }
 0x30b   : > { %2234 = vpow2.f32 %v1842_v20  ;;  %v1488_v1 = vadd.f32 %v1456_v62, %v1147_v22  ;;  %v1457_v15 = vmul.f32 %v2233_v60, %v1329_v8 }
 0x30c   : > { %v1727_v61 = vpop.f32.mrf.mxu1 }
 0x30d   : > { %v1728_v2 = vadd.f32 %v1727_v61, %v1614_v46  ;;  %1661 = vmatmul.f32.gmra.mxu0 %v1488_v1  ;;  %v1520_v59 = vmul.f32 %v1488_v1, %v1488_v1 }
 0x30f   : > { %v1798_v9 = vadd.f32 %v3129_v63, %v1728_v2  ;;  %1774 = vmatmul.f32.gmra.mxu1 %v1520_v59 }
 0x310   : > { %v1149_v6 = vpop.f32.mrf.mxu2 }
 0x311   : > { %v2235_v27 = vpop.eup %2234  ;;  %v1844_v30 = vmul.f32 1.442695, %v1798_v9  ;;  %v1150_v13 = vadd.f32 %v1149_v6, %v2980_v43 }
 0x312   : > { %1893 = vst [vmem:[%s3143_s28 + $0x68] sm:$0xff] %v2235_v27  ;;  %v1617_v17 = vpop.f32.mrf.mxu0 }
 0x313   : > { %2236 = vpow2.f32 %v1844_v30  ;;  %v1489_v24 = vadd.f32 %v1457_v15, %v1150_v13 }
 0x314   : > { %v1730_v4 = vpop.f32.mrf.mxu1 }
 0x315   : > { %v1731_v5 = vadd.f32 %v1730_v4, %v1617_v17  ;;  %1664 = vmatmul.f32.gmra.mxu0 %v1489_v24  ;;  %v1521_v7 = vmul.f32 %v1489_v24, %v1489_v24 }
 0x317   : > { %v1799_v44 = vadd.f32 %v3129_v63, %v1731_v5  ;;  %1777 = vmatmul.f32.gmra.mxu1 %v1521_v7 }
 0x319   : > { %v2237_v50 = vpop.eup %2236  ;;  %v1846_v14 = vmul.f32 1.442695, %v1799_v44 }
 0x31a   : > { %1894 = vst [vmem:[%s3143_s28 + $0x70] sm:$0xff] %v2237_v50  ;;  %v1620_v57 = vpop.f32.mrf.mxu0 }
 0x31b   : > { %2238 = vpow2.f32 %v1846_v14 }
 0x31c   : > { %v1733_v43 = vpop.f32.mrf.mxu1 }
 0x31d   : > { %v1734_v32 = vadd.f32 %v1733_v43, %v1620_v57 }
 0x31f   : > { %v1800_v35 = vadd.f32 %v3129_v63, %v1734_v32 }
 0x321   : > { %v2239_v37 = vpop.eup %2238  ;;  %v1848_v33 = vmul.f32 1.442695, %v1800_v35 }
 0x322   : > { %1895 = vst [vmem:[%s3143_s28 + $0x78] sm:$0xff] %v2239_v37  ;;  %v1623_v18 = vpop.f32.mrf.mxu0 }
 0x323   : > { %2240 = vpow2.f32 %v1848_v33 }
 0x324   : > { %v1736_v3 = vpop.f32.mrf.mxu1 }
 0x325   : > { %v1737_v19 = vadd.f32 %v1736_v3, %v1623_v18 }
 0x327   : > { %v1801_v21 = vadd.f32 %v3129_v63, %v1737_v19 }
 0x329   : > { %v2241_v26 = vpop.eup %2240  ;;  %v1850_v28 = vmul.f32 1.442695, %v1801_v21 }
 0x32a   : > { %1896 = vst [vmem:[%s3143_s28 + $0x80] sm:$0xff] %v2241_v26  ;;  %v1626_v23 = vpop.f32.mrf.mxu0 }
 0x32b   : > { %2242 = vpow2.f32 %v1850_v28 }
 0x32c   : > { %v1739_v36 = vpop.f32.mrf.mxu1 }
 0x32d   : > { %v1740_v42 = vadd.f32 %v1739_v36, %v1626_v23 }
 0x32f   : > { %v1802_v47 = vadd.f32 %v3129_v63, %v1740_v42 }
 0x331   : > { %v2243_v49 = vpop.eup %2242  ;;  %v1852_v41 = vmul.f32 1.442695, %v1802_v47 }
 0x332   : > { %1897 = vst [vmem:[%s3143_s28 + $0x88] sm:$0xff] %v2243_v49  ;;  %v1629_v31 = vpop.f32.mrf.mxu0 }
 0x333   : > { %2244 = vpow2.f32 %v1852_v41 }
 0x334   : > { %v1742_v45 = vpop.f32.mrf.mxu1 }
 0x335   : > { %v1743_v25 = vadd.f32 %v1742_v45, %v1629_v31 }
 0x337   : > { %v1803_v29 = vadd.f32 %v3129_v63, %v1743_v25 }
 0x339   : > { %v2245_v12 = vpop.eup %2244  ;;  %v1854_v16 = vmul.f32 1.442695, %v1803_v29 }
 0x33a   : > { %1898 = vst [vmem:[%s3143_s28 + $0x90] sm:$0xff] %v2245_v12  ;;  %v1632_v53 = vpop.f32.mrf.mxu0 }
 0x33b   : > { %2246 = vpow2.f32 %v1854_v16 }
 0x33c   : > { %v1745_v11 = vpop.f32.mrf.mxu1 }
 0x33d   : > { %v1746_v56 = vadd.f32 %v1745_v11, %v1632_v53 }
 0x33f   : > { %v1804_v52 = vadd.f32 %v3129_v63, %v1746_v56 }
 0x341   : > { %v2247_v54 = vpop.eup %2246  ;;  %v1856_v34 = vmul.f32 1.442695, %v1804_v52 }
 0x342   : > { %1899 = vst [vmem:[%s3143_s28 + $0x98] sm:$0xff] %v2247_v54  ;;  %v1635_v55 = vpop.f32.mrf.mxu0 }
 0x343   : > { %2248 = vpow2.f32 %v1856_v34 }
 0x344   : > { %v1748_v58 = vpop.f32.mrf.mxu1 }
 0x345   : > { %v1749_v39 = vadd.f32 %v1748_v58, %v1635_v55 }
 0x347   : > { %v1805_v10 = vadd.f32 %v3129_v63, %v1749_v39 }
 0x349   : > { %v2249_v38 = vpop.eup %2248  ;;  %v1858_v48 = vmul.f32 1.442695, %v1805_v10 }
 0x34a   : > { %1900 = vst [vmem:[%s3143_s28 + $0xa0] sm:$0xff] %v2249_v38  ;;  %v1638_v51 = vpop.f32.mrf.mxu0 }
 0x34b   : > { %2250 = vpow2.f32 %v1858_v48 }
 0x34c   : > { %v1751_v40 = vpop.f32.mrf.mxu1 }
 0x34d   : > { %v1752_v20 = vadd.f32 %v1751_v40, %v1638_v51 }
 0x34f   : > { %v1806_v22 = vadd.f32 %v3129_v63, %v1752_v20 }
 0x351   : > { %v2251_v62 = vpop.eup %2250  ;;  %v1860_v46 = vmul.f32 1.442695, %v1806_v22 }
 0x352   : > { %1901 = vst [vmem:[%s3143_s28 + $0xa8] sm:$0xff] %v2251_v62  ;;  %v1641_v1 = vpop.f32.mrf.mxu0 }
 0x353   : > { %2252 = vpow2.f32 %v1860_v46 }
 0x354   : > { %v1754_v0 = vpop.f32.mrf.mxu1 }
 0x355   : > { %v1755_v61 = vadd.f32 %v1754_v0, %v1641_v1 }
 0x357   : > { %v1807_v2 = vadd.f32 %v3129_v63, %v1755_v61 }
 0x359   : > { %v2253_v59 = vpop.eup %2252  ;;  %v1862_v60 = vmul.f32 1.442695, %v1807_v2 }
 0x35a   : > { %1902 = vst [vmem:[%s3143_s28 + $0xb0] sm:$0xff] %v2253_v59  ;;  %v1644_v8 = vpop.f32.mrf.mxu0 }
 0x35b   : > { %2254 = vpow2.f32 %v1862_v60 }
 0x35c   : > { %v1757_v9 = vpop.f32.mrf.mxu1 }
 0x35d   : > { %v1758_v6 = vadd.f32 %v1757_v9, %v1644_v8 }
 0x35f   : > { %v1808_v27 = vadd.f32 %v3129_v63, %v1758_v6 }
 0x361   : > { %v2255_v30 = vpop.eup %2254  ;;  %v1864_v13 = vmul.f32 1.442695, %v1808_v27 }
 0x362   : > { %1903 = vst [vmem:[%s3143_s28 + $0xb8] sm:$0xff] %v2255_v30  ;;  %v1647_v15 = vpop.f32.mrf.mxu0 }
 0x363   : > { %2256 = vpow2.f32 %v1864_v13 }
 0x364   : > { %v1760_v17 = vpop.f32.mrf.mxu1 }
 0x365   : > { %v1761_v24 = vadd.f32 %v1760_v17, %v1647_v15 }
 0x367   : > { %v1809_v4 = vadd.f32 %v3129_v63, %v1761_v24 }
 0x369   : > { %v2257_v5 = vpop.eup %2256  ;;  %v1866_v7 = vmul.f32 1.442695, %v1809_v4 }
 0x36a   : > { %1904 = vst [vmem:[%s3143_s28 + $0xc0] sm:$0xff] %v2257_v5  ;;  %v1650_v44 = vpop.f32.mrf.mxu0 }
 0x36b   : > { %2258 = vpow2.f32 %v1866_v7 }
 0x36c   : > { %v1763_v50 = vpop.f32.mrf.mxu1 }
 0x36d   : > { %v1764_v14 = vadd.f32 %v1763_v50, %v1650_v44 }
 0x36f   : > { %v1810_v57 = vadd.f32 %v3129_v63, %v1764_v14 }
 0x371   : > { %v2259_v43 = vpop.eup %2258  ;;  %v1868_v32 = vmul.f32 1.442695, %v1810_v57 }
 0x372   : > { %1905 = vst [vmem:[%s3143_s28 + $0xc8] sm:$0xff] %v2259_v43  ;;  %v1653_v35 = vpop.f32.mrf.mxu0 }
 0x373   : > { %2260 = vpow2.f32 %v1868_v32 }
 0x374   : > { %v1766_v37 = vpop.f32.mrf.mxu1 }
 0x375   : > { %v1767_v33 = vadd.f32 %v1766_v37, %v1653_v35 }
 0x377   : > { %v1811_v18 = vadd.f32 %v3129_v63, %v1767_v33 }
 0x379   : > { %v2261_v3 = vpop.eup %2260  ;;  %v1870_v19 = vmul.f32 1.442695, %v1811_v18 }
 0x37a   : > { %1906 = vst [vmem:[%s3143_s28 + $0xd0] sm:$0xff] %v2261_v3  ;;  %v1656_v21 = vpop.f32.mrf.mxu0 }
 0x37b   : > { %2262 = vpow2.f32 %v1870_v19 }
 0x37c   : > { %v1769_v26 = vpop.f32.mrf.mxu1 }
 0x37d   : > { %v1770_v28 = vadd.f32 %v1769_v26, %v1656_v21 }
 0x37f   : > { %v1812_v23 = vadd.f32 %v3129_v63, %v1770_v28 }
 0x381   : > { %v2263_v36 = vpop.eup %2262  ;;  %v1872_v42 = vmul.f32 1.442695, %v1812_v23 }
 0x382   : > { %1907 = vst [vmem:[%s3143_s28 + $0xd8] sm:$0xff] %v2263_v36  ;;  %v1659_v47 = vpop.f32.mrf.mxu0 }
 0x383   : > { %2264 = vpow2.f32 %v1872_v42 }
 0x384   : > { %v1772_v49 = vpop.f32.mrf.mxu1 }
 0x385   : > { %v1773_v41 = vadd.f32 %v1772_v49, %v1659_v47 }
 0x387   : > { %v1813_v31 = vadd.f32 %v3129_v63, %v1773_v41 }
 0x389   : > { %v2265_v45 = vpop.eup %2264  ;;  %v1874_v25 = vmul.f32 1.442695, %v1813_v31 }
 0x38a   : > { %1908 = vst [vmem:[%s3143_s28 + $0xe0] sm:$0xff] %v2265_v45  ;;  %v1662_v29 = vpop.f32.mrf.mxu0 }
 0x38b   : > { %2266 = vpow2.f32 %v1874_v25 }
 0x38c   : > { %v1775_v12 = vpop.f32.mrf.mxu1 }
 0x38d   : > { %v1776_v16 = vadd.f32 %v1775_v12, %v1662_v29 }
 0x38f   : > { %v1814_v53 = vadd.f32 %v3129_v63, %v1776_v16 }
 0x391   : > { %v2267_v11 = vpop.eup %2266  ;;  %v1876_v56 = vmul.f32 1.442695, %v1814_v53 }
 0x392   : > { %1909 = vst [vmem:[%s3143_s28 + $0xe8] sm:$0xff] %v2267_v11  ;;  %v1665_v52 = vpop.f32.mrf.mxu0 }
 0x393   : > { %2268 = vpow2.f32 %v1876_v56 }
 0x394   : > { %v1778_v54 = vpop.f32.mrf.mxu1 }
 0x395   : > { %v1779_v34 = vadd.f32 %v1778_v54, %v1665_v52 }
 0x397   : > { %v1815_v55 = vadd.f32 %v3129_v63, %v1779_v34 }
 0x399   : > { %v2269_v58 = vpop.eup %2268  ;;  %v1878_v39 = vmul.f32 1.442695, %v1815_v55 }
 0x39a   : > { %1910 = vst [vmem:[%s3143_s28 + $0xf0] sm:$0xff] %v2269_v58 }
 0x39b   : > { %2270 = vpow2.f32 %v1878_v39 }
 0x3a1   : > { %v2271_v10 = vpop.eup %2270 }
 0x3a2   : > { %1911 = vst [vmem:[%s3143_s28 + $0xf8] sm:$0xff] %v2271_v10 }
 0x3a3 PF: > { %s20_s13 = sadd.s32 1, %s2278_s13  }
 0x3a4   : > { %p17_p4 = scmp.ge.s32.totalorder %s20_s13, 4  }
 0x3a6   :  { %19 = sbr.rel (!%p17_p4) target bundleno = 1 (0x1), region = 93 }

</bundles_post_ra>
